<compile_context>
chip_gen: v7x
topology: tpu7x:2x2x1
jax: 0.10.0
libtpu: 0.0.40
codegen_flags: <defaults>
</compile_context>

<pallas_src>
import functools

import jax
import jax.numpy as jnp
from jax.experimental import pallas as pl
from jax.experimental.pallas import tpu as pltpu

BN_EPS = 1e-5
LEAKY_SLOPE = 0.1


def _default_vmem_limit():
    # v5e/v6e: 128 MiB physical VMEM; v7x: 64 MiB per TensorCore.
    try:
        cap = pltpu.get_tpu_info().vmem_capacity_bytes
        return min(int(cap) * 3 // 4, 100 * 1024 * 1024)
    except Exception:
        return 48 * 1024 * 1024      # conservative (v7x-safe) fallback


VMEM_LIMIT = _default_vmem_limit()
# Bigger M tiles on 128-MiB generations; keep v7x within its 64 MiB budget
# (worst-case resident set at tm=512, K=4608, C=1024 is ~29 MiB).
_TM_PREFS = ((1024, 512, 256, 128) if VMEM_LIMIT >= 80 * 1024 * 1024
             else (512, 256, 128))

CONFIG = [(32, 3, 1), (64, 3, 2), ["B", 1], (128, 3, 2), ["B", 2], (256, 3, 2),
          ["B", 8], (512, 3, 2), ["B", 8], (1024, 3, 2), ["B", 4], (512, 1, 1),
          (1024, 3, 1), "S", (256, 1, 1), "U", (256, 1, 1), (512, 3, 1), "S",
          (128, 1, 1), "U", (128, 1, 1), (256, 3, 1), "S"]


# ----------------------------------------------------------------------------
# Tiling helpers
# ----------------------------------------------------------------------------
def _round_up(x, m):
    return ((x + m - 1) // m) * m


def _m_tiling(M):
    """Return (padded_M, tile_M).  Padded rows are zeros: they contribute
    nothing to the BN sums (which divide by the real M) and are sliced off."""
    for tm in _TM_PREFS:
        if M % tm == 0:
            n = M // tm
            if n >= 8 and n % 2 == 1:
                return M + tm, tm       # even tile count -> both v7x TCs busy
            return M, tm
    if M <= 1024:
        mp = _round_up(M, 8)            # sublane-aligned single tile
        return mp, mp
    return _round_up(M, 256), 256


def _split_grid(n_tiles):
    """Leading 'parallel' axis so v7x's two TensorCores both run even though
    the Cout axis collapsed to a single resident-weight tile.  Stats become
    per-split partials (no cross-core race); combined in the wrapper."""
    if n_tiles >= 2 and n_tiles % 2 == 0:
        return 2, n_tiles // 2
    return 1, n_tiles


# ----------------------------------------------------------------------------
# Kernel 1: bf16 matmul (MXU, full-Cout resident weights) + per-channel
#           sum / sum-of-squares accumulation (training-mode BatchNorm stats).
# grid = (M-split [parallel], M tiles [arbitrary]); stats are resident
# accumulators across the inner M axis, one partial per split.
# ----------------------------------------------------------------------------
def _matmul_stats_kernel(p_ref, w_ref, y_ref, s1_ref, s2_ref):
    i = pl.program_id(1)
    acc = jnp.dot(p_ref[...], w_ref[...], preferred_element_type=jnp.float32)
    y_ref[...] = acc.astype(y_ref.dtype)

    @pl.when(i == 0)
    def _():
        s1_ref[...] = jnp.zeros_like(s1_ref)
        s2_ref[...] = jnp.zeros_like(s2_ref)

    # f32 partial sums for batch statistics (computed from the f32 accumulator,
    # not the bf16-rounded y).
    s1_ref[...] += jnp.sum(acc, axis=0, keepdims=True)[None]
    s2_ref[...] += jnp.sum(acc * acc, axis=0, keepdims=True)[None]


def _conv_matmul_stats(patches, w2d, tm):
    M, K = patches.shape
    C = w2d.shape[1]
    n_tiles = M // tm
    n_par, inner = _split_grid(n_tiles)
    cost = pl.CostEstimate(
        flops=2 * M * K * C,
        transcendentals=0,
        bytes_accessed=(M * K + K * C + M * C) * 2 + 2 * n_par * C * 4)
    y, s1, s2 = pl.pallas_call(
        _matmul_stats_kernel,
        out_shape=(
            jax.ShapeDtypeStruct((M, C), jnp.bfloat16),
            jax.ShapeDtypeStruct((n_par, 1, C), jnp.float32),
            jax.ShapeDtypeStruct((n_par, 1, C), jnp.float32),
        ),
        grid_spec=pltpu.PrefetchScalarGridSpec(
            num_scalar_prefetch=0,
            grid=(n_par, inner),
            in_specs=[
                pl.BlockSpec((tm, K), lambda c, i: (c * inner + i, 0)),
                # Full (K, Cout) weight block, constant index map -> fetched
                # once and held resident while the patch rows stream.
                pl.BlockSpec((K, C), lambda c, i: (0, 0)),
            ],
            out_specs=[
                pl.BlockSpec((tm, C), lambda c, i: (c * inner + i, 0)),
                pl.BlockSpec((1, 1, C), lambda c, i: (c, 0, 0)),
                pl.BlockSpec((1, 1, C), lambda c, i: (c, 0, 0)),
            ],
        ),
        compiler_params=pltpu.CompilerParams(
            dimension_semantics=("parallel", "arbitrary"),
            vmem_limit_bytes=VMEM_LIMIT,
        ),
        cost_estimate=cost,
    )(patches, w2d)
    # Combine per-split partial statistics.
    return y, jnp.sum(s1, axis=0), jnp.sum(s2, axis=0)


# ----------------------------------------------------------------------------
# Kernel 1b: bias-only conv (detection head, bn_act=False), f32 output,
# resident full-Cout weights.
# ----------------------------------------------------------------------------
def _matmul_bias_kernel(p_ref, w_ref, b_ref, o_ref):
    acc = jnp.dot(p_ref[...], w_ref[...], preferred_element_type=jnp.float32)
    o_ref[...] = acc + b_ref[...]


def _conv_matmul_bias(patches, w2d, bias, tm):
    M, K = patches.shape
    C = w2d.shape[1]
    cost = pl.CostEstimate(
        flops=2 * M * K * C,
        transcendentals=0,
        bytes_accessed=(M * K + K * C) * 2 + (M * C + C) * 4)
    return pl.pallas_call(
        _matmul_bias_kernel,
        out_shape=jax.ShapeDtypeStruct((M, C), jnp.float32),
        grid_spec=pltpu.PrefetchScalarGridSpec(
            num_scalar_prefetch=0,
            grid=(M // tm,),
            in_specs=[
                pl.BlockSpec((tm, K), lambda i: (i, 0)),
                pl.BlockSpec((K, C), lambda i: (0, 0)),
                pl.BlockSpec((1, C), lambda i: (0, 0)),
            ],
            out_specs=pl.BlockSpec((tm, C), lambda i: (i, 0)),
        ),
        compiler_params=pltpu.CompilerParams(
            dimension_semantics=("parallel",),
            vmem_limit_bytes=VMEM_LIMIT,
        ),
        cost_estimate=cost,
    )(patches, w2d, bias)


# ----------------------------------------------------------------------------
# Kernel 2: fused BN affine (scale/shift) + LeakyReLU (+ optional residual),
# tiled over M, bf16 in / bf16 out, f32 math.
# TODO(synk): an inference-mode path (running BN stats) would let this epilogue
# fuse directly into kernel 1 and remove the y round-trip entirely.
# ----------------------------------------------------------------------------
def _bn_act_kernel(y_ref, sc_ref, sh_ref, o_ref):
    y = y_ref[...].astype(jnp.float32) * sc_ref[...] + sh_ref[...]
    y = jnp.where(y >= 0, y, LEAKY_SLOPE * y)
    o_ref[...] = y.astype(o_ref.dtype)


def _bn_act_res_kernel(y_ref, sc_ref, sh_ref, r_ref, o_ref):
    y = y_ref[...].astype(jnp.float32) * sc_ref[...] + sh_ref[...]
    y = jnp.where(y >= 0, y, LEAKY_SLOPE * y)
    o_ref[...] = (y + r_ref[...].astype(jnp.float32)).astype(o_ref.dtype)


def _bn_act_apply(y, scale, shift, tm, res=None):
    M, C = y.shape
    grid = (M // tm,)
    in_arrays = [y, scale, shift]
    in_specs = [
        pl.BlockSpec((tm, C), lambda i: (i, 0)),
        pl.BlockSpec((1, C), lambda i: (0, 0)),
        pl.BlockSpec((1, C), lambda i: (0, 0)),
    ]
    kernel = _bn_act_kernel
    if res is not None:
        in_arrays.append(res)
        in_specs.append(pl.BlockSpec((tm, C), lambda i: (i, 0)))
        kernel = _bn_act_res_kernel
    return pl.pallas_call(
        kernel,
        out_shape=jax.ShapeDtypeStruct((M, C), jnp.bfloat16),
        grid_spec=pltpu.PrefetchScalarGridSpec(
            num_scalar_prefetch=0,
            grid=grid,
            in_specs=in_specs,
            out_specs=pl.BlockSpec((tm, C), lambda i: (i, 0)),
        ),
        compiler_params=pltpu.CompilerParams(
            dimension_semantics=("parallel",),
            vmem_limit_bytes=VMEM_LIMIT,
        ),
    )(*in_arrays)


# ----------------------------------------------------------------------------
# ConvolutionBlock (pad + im2col glue around the Pallas kernels)
# ----------------------------------------------------------------------------
@functools.partial(jax.jit, static_argnames=("k", "s", "pad", "bn", "cout"))
def _conv_block_core(x, w2d, gamma, beta, res, *, k, s, pad, bn, cout):
    N, H, W, Cin = x.shape
    if pad:
        x = jnp.pad(x, ((0, 0), (pad, pad), (pad, pad), (0, 0)))
    Hp, Wp = x.shape[1], x.shape[2]
    H_out = (Hp - k) // s + 1
    W_out = (Wp - k) // s + 1
    M = N * H_out * W_out
    if k == 1 and s == 1:
        patches = x.reshape(M, Cin)
    else:
        # TODO(synk): replace the HBM-materialized im2col with in-kernel halo
        # DMA (pl.ANY input + make_async_copy of a (s*th+2)-row NHWC strip per
        # grid step) to remove the k^2 HBM read inflation on 3x3 layers — the
        # dominant remaining bandwidth cost at real (416x416) inputs, esp. v5e.
        cols = [x[:, kh:kh + s * (H_out - 1) + 1:s,
                  kw:kw + s * (W_out - 1) + 1:s, :]
                for kh in range(k) for kw in range(k)]
        patches = jnp.concatenate(cols, axis=-1).reshape(M, k * k * Cin)

    M_pad, tm = _m_tiling(M)
    if M_pad != M:
        patches = jnp.pad(patches, ((0, M_pad - M), (0, 0)))

    if bn:
        y, ssum, ssq = _conv_matmul_stats(patches, w2d, tm)
        # Training-mode BatchNorm2d: biased batch stats over the real M rows.
        # NOTE: single-pass E[x^2]-E[x]^2 in f32; conv outputs here have mean
        # O(std) so cancellation is benign — the clamp guards the pathological
        # case.  A Welford / shifted-mean variant would be the robust fix.
        mean = ssum / M
        var = jnp.maximum(ssq / M - mean * mean, 0.0)
        scale = gamma * jax.lax.rsqrt(var + BN_EPS)
        shift = beta - mean * scale
        res2d = None
        if res is not None:
            res2d = res.reshape(M, cout)
            if M_pad != M:
                res2d = jnp.pad(res2d, ((0, M_pad - M), (0, 0)))
        out = _bn_act_apply(y, scale, shift, tm, res2d)
        return out[:M].reshape(N, H_out, W_out, cout)
    else:
        out = _conv_matmul_bias(patches, w2d, beta, tm)
        return out[:M, :cout].reshape(N, H_out, W_out, cout)


def conv_block_apply(x, layer, residual=None):
    p = layer["params"]
    return _conv_block_core(x, p["w2d"], p["gamma"], p["beta"], residual,
                            k=layer["ksize"], s=layer["stride"],
                            pad=layer["pad"], bn=layer["bn"],
                            cout=layer["cout"])


def residual_apply(x, layer):
    for c1, c2 in layer["blocks"]:
        h = conv_block_apply(x, c1)
        if layer["use_residual"]:
            x = conv_block_apply(h, c2, residual=x)   # fused residual add
        else:
            x = conv_block_apply(h, c2)
    return x


def scale_pred_apply(x, layer):
    nc = layer["num_classes"]
    y = conv_block_apply(x, layer["conv1"])
    y = conv_block_apply(y, layer["conv2"])
    N, H, W, _ = y.shape
    # matches torch: .reshape(N, 3, nc+5, H, W).permute(0, 1, 3, 4, 2)
    y = y.reshape(N, H, W, 3, nc + 5)
    return jnp.transpose(y, (0, 3, 1, 2, 4))


# ----------------------------------------------------------------------------
# Parameter construction (deterministic, in-script)
# ----------------------------------------------------------------------------
def _init_conv_block(key, cin, cout, ksize, stride, bn_act):
    kw_, kg, kb = jax.random.split(key, 3)
    fan_in = cin * ksize * ksize
    # torch conv weight layout is (Cout, Cin, KH, KW); convert to matmul form.
    w = jax.random.normal(kw_, (cout, cin, ksize, ksize), jnp.float32)
    w = w / jnp.sqrt(jnp.float32(fan_in))
    w2d = jnp.transpose(w, (2, 3, 1, 0)).reshape(ksize * ksize * cin, cout)
    if bn_act:
        gamma = 1.0 + 0.1 * jax.random.normal(kg, (1, cout), jnp.float32)
        beta = 0.1 * jax.random.normal(kb, (1, cout), jnp.float32)
    else:
        # bn_act=False path: conv bias, no BN, no activation (detection head).
        # Pad Cout to a lane-dense multiple of 128 for unmasked vector stores.
        cpad = ((cout + 127) // 128) * 128
        gamma = jnp.ones((1, cpad), jnp.float32)              # unused
        bias = 0.1 * jax.random.normal(kb, (1, cout), jnp.float32)
        beta = jnp.pad(bias, ((0, 0), (0, cpad - cout)))
        if cpad != cout:
            w2d = jnp.pad(w2d, ((0, 0), (0, cpad - cout)))
    return {"type": "conv",
            "params": {"w2d": w2d.astype(jnp.bfloat16),
                       "gamma": gamma, "beta": beta},
            "ksize": ksize, "stride": stride,
            "pad": 1 if ksize == 3 else 0, "bn": bn_act, "cout": cout}


def build_yolov3(key, in_channels=3, num_classes=80):
    keys = iter(jax.random.split(key, 1024))
    layers = []
    c = in_channels

    def conv(cin, cout, k, s, bn=True):
        return _init_conv_block(next(keys), cin, cout, k, s, bn)

    for module in CONFIG:
        if isinstance(module, tuple):
            cout, k, s = module
            layers.append(conv(c, cout, k, s))
            c = cout
        elif isinstance(module, list):
            reps = module[1]
            blocks = [(conv(c, c // 2, 1, 1), conv(c // 2, c, 3, 1))
                      for _ in range(reps)]
            layers.append({"type": "residual", "use_residual": True,
                           "num_repeats": reps, "blocks": blocks})
        elif module == "S":
            layers.append({"type": "residual", "use_residual": False,
                           "num_repeats": 1,
                           "blocks": [(conv(c, c // 2, 1, 1),
                                       conv(c // 2, c, 3, 1))]})
            layers.append(conv(c, c // 2, 1, 1))
            layers.append({"type": "scale_pred",
                           "num_classes": num_classes,
                           "conv1": conv(c // 2, c, 3, 1),
                           "conv2": conv(c, (num_classes + 5) * 3, 1, 1,
                                         bn=False)})
            c = c // 2
        elif module == "U":
            layers.append({"type": "upsample"})
            c = c * 3
    return layers


# ----------------------------------------------------------------------------
# YOLOv3 forward (mirrors the PyTorch module's forward)
# ----------------------------------------------------------------------------
def yolo_forward(layers, x_nchw):
    x = jnp.transpose(x_nchw, (0, 2, 3, 1)).astype(jnp.bfloat16)  # NCHW -> NHWC
    outputs = []
    routes = []
    for layer in layers:
        t = layer["type"]
        if t == "scale_pred":
            outputs.append(scale_pred_apply(x, layer))
            continue
        if t == "conv":
            x = conv_block_apply(x, layer)
        elif t == "residual":
            x = residual_apply(x, layer)
            if layer["num_repeats"] == 8:
                routes.append(x)
        elif t == "upsample":
            # nn.Upsample(scale_factor=2), nearest mode, then cat on channels.
            # TODO(synk): fuse the 2x nearest upsample + channel concat into the
            # consuming 1x1 conv (split-K accumulated matmul) to avoid
            # materializing the (N, 2H, 2W, 3c) tensor in HBM.
            x = jnp.repeat(jnp.repeat(x, 2, axis=1), 2, axis=2)
            x = jnp.concatenate([x, routes[-1]], axis=-1)
            routes.pop()
    return outputs


if __name__ == "__main__":
    num_classes = 80
    key = jax.random.PRNGKey(0)
    pkey, xkey = jax.random.split(key)
    layers = build_yolov3(pkey, in_channels=3, num_classes=num_classes)
    # Smallest spatial size compatible with 5 stride-2 stages: 32x32 (NCHW).
    x = jax.random.normal(xkey, (2, 3, 32, 32), jnp.float32)

    outs = yolo_forward(layers, x)
    outs = jax.block_until_ready(outs)

    expected = [(2, 3, 1, 1, num_classes + 5),
                (2, 3, 2, 2, num_classes + 5),
                (2, 3, 4, 4, num_classes + 5)]
    got = [tuple(o.shape) for o in outs]
    assert got == expected, f"shape mismatch: {got} vs {expected}"
    assert all(bool(jnp.all(jnp.isfinite(o))) for o in outs), "non-finite output"
    print("KERNEL_OK")
</pallas_src>

<mosaic_0001>
module attributes {stable_mosaic.version = 11 : i64} {
  func.func @_matmul_stats_kernel(%arg0: i32, %arg1: i32, %arg2: memref<512x27xbf16, #tpu.memory_space<vmem>>, %arg3: memref<27x32xbf16, #tpu.memory_space<vmem>>, %arg4: memref<512x32xbf16, #tpu.memory_space<vmem>>, %arg5: memref<1x1x32xf32, #tpu.memory_space<vmem>>, %arg6: memref<1x1x32xf32, #tpu.memory_space<vmem>>) attributes {dimension_semantics = [#tpu.dimension_semantics<parallel>, #tpu.dimension_semantics<arbitrary>], iteration_bounds = array<i64: 2, 2>, scalar_prefetch = 0 : i64, scratch_operands = 0 : i64, tpu.core_type = #tpu.core_type<tc>, window_params = [{transform_indices = @transform_0, window_bounds = array<i64: 512, 27>}, {pipeline_mode = #tpu.pipeline_mode<synchronous>, transform_indices = @transform_1, window_bounds = array<i64: 27, 32>}, {transform_indices = @transform_2, window_bounds = array<i64: 512, 32>}, {transform_indices = @transform_3, window_bounds = array<i64: 1, 1, 32>}, {transform_indices = @transform_4, window_bounds = array<i64: 1, 1, 32>}]} {
    %c0 = arith.constant 0 : index
    %c0_0 = arith.constant 0 : index
    %0 = vector.load %arg2[%c0, %c0_0] : memref<512x27xbf16, #tpu.memory_space<vmem>>, vector<512x27xbf16>
    %c0_1 = arith.constant 0 : index
    %c0_2 = arith.constant 0 : index
    %1 = vector.load %arg3[%c0_1, %c0_2] : memref<27x32xbf16, #tpu.memory_space<vmem>>, vector<27x32xbf16>
    %cst = arith.constant dense<0.000000e+00> : vector<512x32xf32>
    %2 = tpu.matmul %0, %1, %cst {dimension_numbers = #tpu.dot_dimension_numbers<[1], [0], [0], [1], [0, 0, 1, 1], [], []>} : vector<512x27xbf16>, vector<27x32xbf16>, vector<512x32xf32> -> vector<512x32xf32>
    %3 = arith.truncf %2 : vector<512x32xf32> to vector<512x32xbf16>
    %c0_3 = arith.constant 0 : index
    %c0_4 = arith.constant 0 : index
    %4 = vector.load %arg4[%c0_3, %c0_4] : memref<512x32xbf16, #tpu.memory_space<vmem>>, vector<512x32xbf16>
    tpu.vector_store %arg4[%c0_3, %c0_4], %3 {strides = array<i32>} : memref<512x32xbf16, #tpu.memory_space<vmem>>, vector<512x32xbf16>,
    %c0_i32 = arith.constant 0 : i32
    %5 = arith.cmpi eq, %arg1, %c0_i32 : i32
    %6 = arith.extui %5 : i1 to i32
    %c0_i32_5 = arith.constant 0 : i32
    %7 = arith.cmpi ne, %6, %c0_i32_5 : i32
    scf.if %7 {
      %cst_20 = arith.constant 0.000000e+00 : f32
      %21 = vector.broadcast %cst_20 : f32 to vector<1x1x32xf32>
      %c0_21 = arith.constant 0 : index
      %c0_22 = arith.constant 0 : index
      %c0_23 = arith.constant 0 : index
      %22 = vector.load %arg5[%c0_21, %c0_22, %c0_23] : memref<1x1x32xf32, #tpu.memory_space<vmem>>, vector<1x1x32xf32>
      tpu.vector_store %arg5[%c0_21, %c0_22, %c0_23], %21 {strides = array<i32>} : memref<1x1x32xf32, #tpu.memory_space<vmem>>, vector<1x1x32xf32>,
      %cst_24 = arith.constant 0.000000e+00 : f32
      %23 = vector.broadcast %cst_24 : f32 to vector<1x1x32xf32>
      %c0_25 = arith.constant 0 : index
      %c0_26 = arith.constant 0 : index
      %c0_27 = arith.constant 0 : index
      %24 = vector.load %arg6[%c0_25, %c0_26, %c0_27] : memref<1x1x32xf32, #tpu.memory_space<vmem>>, vector<1x1x32xf32>
      tpu.vector_store %arg6[%c0_25, %c0_26, %c0_27], %23 {strides = array<i32>} : memref<1x1x32xf32, #tpu.memory_space<vmem>>, vector<1x1x32xf32>,
    } else {
    }
    %c0_6 = arith.constant 0 : index
    %c0_7 = arith.constant 0 : index
    %c0_8 = arith.constant 0 : index
    %8 = vector.load %arg5[%c0_6, %c0_7, %c0_8] : memref<1x1x32xf32, #tpu.memory_space<vmem>>, vector<1x1x32xf32>
    %cst_9 = arith.constant dense<0.000000e+00> : vector<32xf32>
    %9 = vector.multi_reduction <add>, %2, %cst_9 [0] : vector<512x32xf32> to vector<32xf32>
    %10 = vector.shape_cast %9 : vector<32xf32> to vector<1x32xf32>
    %11 = vector.shape_cast %10 : vector<1x32xf32> to vector<1x1x32xf32>
    %12 = arith.addf %8, %11 : vector<1x1x32xf32>
    %c0_10 = arith.constant 0 : index
    %c0_11 = arith.constant 0 : index
    %c0_12 = arith.constant 0 : index
    %13 = vector.load %arg5[%c0_10, %c0_11, %c0_12] : memref<1x1x32xf32, #tpu.memory_space<vmem>>, vector<1x1x32xf32>
    tpu.vector_store %arg5[%c0_10, %c0_11, %c0_12], %12 {strides = array<i32>} : memref<1x1x32xf32, #tpu.memory_space<vmem>>, vector<1x1x32xf32>,
    %c0_13 = arith.constant 0 : index
    %c0_14 = arith.constant 0 : index
    %c0_15 = arith.constant 0 : index
    %14 = vector.load %arg6[%c0_13, %c0_14, %c0_15] : memref<1x1x32xf32, #tpu.memory_space<vmem>>, vector<1x1x32xf32>
    %15 = arith.mulf %2, %2 : vector<512x32xf32>
    %cst_16 = arith.constant dense<0.000000e+00> : vector<32xf32>
    %16 = vector.multi_reduction <add>, %15, %cst_16 [0] : vector<512x32xf32> to vector<32xf32>
    %17 = vector.shape_cast %16 : vector<32xf32> to vector<1x32xf32>
    %18 = vector.shape_cast %17 : vector<1x32xf32> to vector<1x1x32xf32>
    %19 = arith.addf %14, %18 : vector<1x1x32xf32>
    %c0_17 = arith.constant 0 : index
    %c0_18 = arith.constant 0 : index
    %c0_19 = arith.constant 0 : index
    %20 = vector.load %arg6[%c0_17, %c0_18, %c0_19] : memref<1x1x32xf32, #tpu.memory_space<vmem>>, vector<1x1x32xf32>
    tpu.vector_store %arg6[%c0_17, %c0_18, %c0_19], %19 {strides = array<i32>} : memref<1x1x32xf32, #tpu.memory_space<vmem>>, vector<1x1x32xf32>,
    return
  }
  func.func @transform_0(%arg0: i32, %arg1: i32) -> (i32, i32) {
    %c2_i32 = arith.constant 2 : i32
    %0 = arith.muli %arg0, %c2_i32 : i32
    %1 = arith.addi %0, %arg1 : i32
    %c0_i32 = arith.constant 0 : i32
    %c0_i32_0 = arith.constant 0 : i32
    return %1, %c0_i32 : i32, i32
  }
  func.func @transform_1(%arg0: i32, %arg1: i32) -> (i32, i32) {
    %c0_i32 = arith.constant 0 : i32
    %c0_i32_0 = arith.constant 0 : i32
    %c0_i32_1 = arith.constant 0 : i32
    return %c0_i32, %c0_i32_0 : i32, i32
  }
  func.func @transform_2(%arg0: i32, %arg1: i32) -> (i32, i32) {
    %c2_i32 = arith.constant 2 : i32
    %0 = arith.muli %arg0, %c2_i32 : i32
    %1 = arith.addi %0, %arg1 : i32
    %c0_i32 = arith.constant 0 : i32
    %c0_i32_0 = arith.constant 0 : i32
    return %1, %c0_i32 : i32, i32
  }
  func.func @transform_3(%arg0: i32, %arg1: i32) -> (i32, i32, i32) {
    %c0_i32 = arith.constant 0 : i32
    %c0_i32_0 = arith.constant 0 : i32
    %c0_i32_1 = arith.constant 0 : i32
    return %arg0, %c0_i32, %c0_i32_0 : i32, i32, i32
  }
  func.func @transform_4(%arg0: i32, %arg1: i32) -> (i32, i32, i32) {
    %c0_i32 = arith.constant 0 : i32
    %c0_i32_0 = arith.constant 0 : i32
    %c0_i32_1 = arith.constant 0 : i32
    return %arg0, %c0_i32, %c0_i32_0 : i32, i32, i32
  }
}

module attributes {stable_mosaic.version = 11 : i64} {
  func.func @_bn_act_kernel(%arg0: i32, %arg1: memref<512x32xbf16, #tpu.memory_space<vmem>>, %arg2: memref<1x32xf32, #tpu.memory_space<vmem>>, %arg3: memref<1x32xf32, #tpu.memory_space<vmem>>, %arg4: memref<512x32xbf16, #tpu.memory_space<vmem>>) attributes {dimension_semantics = [#tpu.dimension_semantics<parallel>], iteration_bounds = array<i64: 4>, scalar_prefetch = 0 : i64, scratch_operands = 0 : i64, tpu.core_type = #tpu.core_type<tc>, window_params = [{transform_indices = @transform_0, window_bounds = array<i64: 512, 32>}, {pipeline_mode = #tpu.pipeline_mode<synchronous>, transform_indices = @transform_1, window_bounds = array<i64: 1, 32>}, {pipeline_mode = #tpu.pipeline_mode<synchronous>, transform_indices = @transform_2, window_bounds = array<i64: 1, 32>}, {transform_indices = @transform_3, window_bounds = array<i64: 512, 32>}]} {
    %c0 = arith.constant 0 : index
    %c0_0 = arith.constant 0 : index
    %0 = vector.load %arg1[%c0, %c0_0] : memref<512x32xbf16, #tpu.memory_space<vmem>>, vector<512x32xbf16>
    %1 = arith.extf %0 : vector<512x32xbf16> to vector<512x32xf32>
    %c0_1 = arith.constant 0 : index
    %c0_2 = arith.constant 0 : index
    %2 = vector.load %arg2[%c0_1, %c0_2] : memref<1x32xf32, #tpu.memory_space<vmem>>, vector<1x32xf32>
    %3 = vector.broadcast %2 : vector<1x32xf32> to vector<512x32xf32>
    %4 = arith.mulf %1, %3 : vector<512x32xf32>
    %c0_3 = arith.constant 0 : index
    %c0_4 = arith.constant 0 : index
    %5 = vector.load %arg3[%c0_3, %c0_4] : memref<1x32xf32, #tpu.memory_space<vmem>>, vector<1x32xf32>
    %6 = vector.broadcast %5 : vector<1x32xf32> to vector<512x32xf32>
    %7 = arith.addf %4, %6 : vector<512x32xf32>
    %cst = arith.constant 0.000000e+00 : f32
    %8 = vector.broadcast %cst : f32 to vector<512x32xf32>
    %9 = arith.cmpf oge, %7, %8 : vector<512x32xf32>
    %cst_5 = arith.constant 1.000000e-01 : f32
    %10 = vector.broadcast %cst_5 : f32 to vector<512x32xf32>
    %11 = arith.mulf %10, %7 : vector<512x32xf32>
    %12 = arith.select %9, %7, %11 : vector<512x32xi1>, vector<512x32xf32>
    %13 = arith.truncf %12 : vector<512x32xf32> to vector<512x32xbf16>
    %c0_6 = arith.constant 0 : index
    %c0_7 = arith.constant 0 : index
    %14 = vector.load %arg4[%c0_6, %c0_7] : memref<512x32xbf16, #tpu.memory_space<vmem>>, vector<512x32xbf16>
    tpu.vector_store %arg4[%c0_6, %c0_7], %13 {strides = array<i32>} : memref<512x32xbf16, #tpu.memory_space<vmem>>, vector<512x32xbf16>,
    return
  }
  func.func @transform_0(%arg0: i32) -> (i32, i32) {
    %c0_i32 = arith.constant 0 : i32
    %c0_i32_0 = arith.constant 0 : i32
    return %arg0, %c0_i32 : i32, i32
  }
  func.func @transform_1(%arg0: i32) -> (i32, i32) {
    %c0_i32 = arith.constant 0 : i32
    %c0_i32_0 = arith.constant 0 : i32
    %c0_i32_1 = arith.constant 0 : i32
    return %c0_i32, %c0_i32_0 : i32, i32
  }
  func.func @transform_2(%arg0: i32) -> (i32, i32) {
    %c0_i32 = arith.constant 0 : i32
    %c0_i32_0 = arith.constant 0 : i32
    %c0_i32_1 = arith.constant 0 : i32
    return %c0_i32, %c0_i32_0 : i32, i32
  }
  func.func @transform_3(%arg0: i32) -> (i32, i32) {
    %c0_i32 = arith.constant 0 : i32
    %c0_i32_0 = arith.constant 0 : i32
    return %arg0, %c0_i32 : i32, i32
  }
}

</mosaic_0001>

<bundles_post_ra>
// kernel: _conv_block_core.2
= control target key start
LH: loop header
LB: loop body
LE: loop exit
PB: predicated region body
PF: predicated region fallthrough
CT: control target
= control target key end

     0   :  { %s2138_s15 = smov 0   ;;  %s2140_s16 = smov 0   ;;  %s3001_s0 = inlined_call_operand.vmem [shape: bf16[2048,27], index: 0, kind: input, shape index: {}]   ;;  %s3002_s1 = inlined_call_operand.vmem [shape: bf16[27,32], index: 1, kind: input, shape index: {}]   ;;  %s3003_s2 = inlined_call_operand.vmem [shape: bf16[2048,32], index: 2, kind: output, shape index: {0}]   ;;  %s3004_s3 = inlined_call_operand.vmem [shape: f32[2,1,32], index: 3, kind: output, shape index: {1}]   ;;  %s3005_s4 = inlined_call_operand.vmem [shape: f32[2,1,32], index: 4, kind: output, shape index: {2}]  }
   0x1   :  { %s2142_s17 = smov 0   ;;  %s2144_s18 = smov 0  }
   0x2   :  { %s2146_s19 = smov 0  }
   0x3 LB: > { %s24_s20 = sadd.s32 1, %s2101_s17  ;;  %s27_s21 = sadd.s32 1, %s2105_s18  ;;  %s2109_s19 = sphi %s2146_s19, %s15_s19   ;;  %s2105_s18 = sphi %s2144_s18, %s3065_s18   ;;  %s2101_s17 = sphi %s2142_s17, %s3064_s17   ;;  %s2097_s16 = sphi %s2140_s16, %s3063_s16   ;;  %s2093_s15 = sphi %s2138_s15, %s3062_s15  }
   0x4   : > { %p25_p0 = scmp.ge.s32.totalorder %s24_s20, 2  ;;  %p1685_p1 = scmp.ge.s32.totalorder %s2109_s19, 1 }
   0x5   : > { %p192_p2 = scmp.lt.s32.totalorder %s2109_s19, 5 }
   0x6   : > { %s3067_s20 = smov (%p25_p0, %s24_s20), 0  ;;  %s3069_s21 = smov (!%p25_p0, %s27_s21), %s2105_s18 }
   0x7   : > { %p193_p3 = pnand %p1685_p1, %p192_p2  ;;  %p29_p4 = scmp.ge.s32.totalorder %s3069_s21, 2 }
   0x9   : > { %s3071_s21 = smov (%p29_p4, %s3069_s21), 0  ;;  %196 = sbr.rel (%p193_p3) target bundleno = 481 (0x1e1), region = 28 }
  0x10   : > { %p248_p5 = scmp.lt.s32.totalorder %s2097_s16, 1  ;;  %v2037_v0 = vld [vmem:[%s3002_s1] sm:$0xff]   ;;  %v2038_v1 = vld [vmem:[%s3002_s1 + $0x8] sm:$0x3f]   ;;  %vm591_vm0 = vcmask 1044480   ;;  %vm592_vm1 = vcmask 1045504  }
  0x11   : > { %1923 = vmatprep.subr.bf16.mxu0 %v2037_v0  ;;  %1991 = vmatprep.subr.bf16.mxu1 %v2037_v0  ;;  %v2111_v2 = vmov 65535   ;;  %s1686_s27 = sshll.u32 %s2097_s16, 1  ;;  %vm494_vm2 = vcmask 220160   ;;  %vm1143_vm3 = vcmask 257024   ;;  %p1822_p7 = scmp.ne.s32.totalorder %s2093_s15, 0 }
  0x12   : > { %s249_s26 = scalar_select %p248_p5, %s2097_s16, 1  ;;  %1924 = vmatpush3.bf16.msra.mxu0 %v2037_v0  ;;  %1993 = vmatpush3.bf16.msra.mxu1 %v2037_v0  ;;  %v593_v3 = vsel %vm591_vm0, 4294967295, %v2111_v2 }
  0x13   : > { %v594_v4 = vsel %vm592_vm1, %v593_v3, 0  ;;  %s229_s8 = sadd.s32 %s2093_s15, %s1686_s27  ;;  %vm1212_vm4 = vcmask (!%p1822_p7), 253952  }
  0x14   : > { %s2184_s30 = scalar_lea.vmem %s3004_s3, %s249_s26  ;;  %s2189_s7 = scalar_lea.vmem %s3005_s4, %s249_s26  ;;  %v596_v5 = vand.u32 %v2038_v1, %v594_v4 }
  0x15   : > { %s1687_s9 = sshll.u32 %s229_s8, 6 }
  0x16   : > { %1925 = vmatprep.subr.bf16.mxu0 %v596_v5  ;;  %1992 = vmatprep.subr.bf16.mxu1 %v596_v5  ;;  %p231_p6 = scmp.lt.s32.totalorder %s1687_s9, 255 }
  0x17   : > { %1926 = vmatpush3.bf16.msra.mxu0 %v596_v5  ;;  %1994 = vmatpush3.bf16.msra.mxu1 %v596_v5 }
  0x18   : > { %s3073_s9 = smov (!%p231_p6, %s1687_s9), 255 }
  0x19   : > { %s1688_s10 = sshll.u32 %s3073_s9, 2 }
  0x1a   : > { %s2200_s13 = scalar_lea.vmem %s3001_s0, %s1688_s10  ;;  %s2271_s22 = scalar_lea.vmem %s3003_s2, %s1688_s10 }
  0x1b   : > { %v2039_v6 = vld [vmem:[%s2200_s13] sm:$0xff]   ;;  %v2041_v8 = vld [vmem:[%s2200_s13 + $0x8] sm:$0xff]   ;;  %v2043_v10 = vld [vmem:[%s2200_s13 + $0x10] sm:$0xff]  }
  0x1c   : > { %v2040_v7 = vld [vmem:[%s2200_s13 + $0x80] sm:$0xff]   ;;  %1927 = vmatprep.mubr.msk.bf16.mxu0 %vm494_vm2, %v2039_v6  ;;  %v2042_v9 = vld [vmem:[%s2200_s13 + $0x88] sm:$0xff]   ;;  %v2044_v11 = vld [vmem:[%s2200_s13 + $0x90] sm:$0xff]  }
  0x1d   : > { %1959 = vmatprep.mubr.msk.bf16.mxu1 %vm494_vm2, %v2040_v7  ;;  %1928 = vmatmul.mubr.msk.bf16.vlgmr.msra.gmra.mrb[0].mxu0 %vm494_vm2, %v2041_v8  ;;  %v2045_v12 = vld [vmem:[%s2200_s13 + $0x18] sm:$0xff]   ;;  %v2047_v14 = vld [vmem:[%s2200_s13 + $0x20] sm:$0xff]   ;;  %v2049_v16 = vld [vmem:[%s2200_s13 + $0x28] sm:$0xff]  }
  0x1e   : > { %1960 = vmatmul.mubr.msk.bf16.vlgmr.msra.gmra.mrb[0].mxu1 %vm494_vm2, %v2042_v9  ;;  %1931 = vmatprep.mubr.msk.bf16.mxu0 %vm494_vm2, %v2043_v10  ;;  %v2046_v13 = vld [vmem:[%s2200_s13 + $0x98] sm:$0xff]   ;;  %v2048_v15 = vld [vmem:[%s2200_s13 + $0xa0] sm:$0xff]   ;;  %v2050_v17 = vld [vmem:[%s2200_s13 + $0xa8] sm:$0xff]  }
  0x1f   : > { %1963 = vmatprep.mubr.msk.bf16.mxu1 %vm494_vm2, %v2044_v11  ;;  %v2051_v18 = vld [vmem:[%s2200_s13 + $0x30] sm:$0xff]   ;;  %v2053_v20 = vld [vmem:[%s2200_s13 + $0x38] sm:$0xff]   ;;  %v2055_v22 = vld [vmem:[%s2200_s13 + $0x40] sm:$0xff]  }
  0x20   : > { %v2052_v19 = vld [vmem:[%s2200_s13 + $0xb0] sm:$0xff]   ;;  %v2054_v21 = vld [vmem:[%s2200_s13 + $0xb8] sm:$0xff]   ;;  %v2056_v23 = vld [vmem:[%s2200_s13 + $0xc0] sm:$0xff]  }
  0x21   : > { %v2057_v24 = vld [vmem:[%s2200_s13 + $0x48] sm:$0xff]   ;;  %v2059_v26 = vld [vmem:[%s2200_s13 + $0x50] sm:$0xff]   ;;  %v2061_v28 = vld [vmem:[%s2200_s13 + $0x58] sm:$0xff]  }
  0x22   : > { %v2058_v25 = vld [vmem:[%s2200_s13 + $0xc8] sm:$0xff]   ;;  %v2060_v27 = vld [vmem:[%s2200_s13 + $0xd0] sm:$0xff]   ;;  %v2062_v29 = vld [vmem:[%s2200_s13 + $0xd8] sm:$0xff]  }
  0x23   : > { %v2063_v30 = vld [vmem:[%s2200_s13 + $0x60] sm:$0xff]   ;;  %v2065_v32 = vld [vmem:[%s2200_s13 + $0x68] sm:$0xff]   ;;  %v2067_v34 = vld [vmem:[%s2200_s13 + $0x70] sm:$0xff]  }
  0x24   : > { %v2064_v31 = vld [vmem:[%s2200_s13 + $0xe0] sm:$0xff]   ;;  %v2066_v33 = vld [vmem:[%s2200_s13 + $0xe8] sm:$0xff]   ;;  %v2068_v35 = vld [vmem:[%s2200_s13 + $0xf0] sm:$0xff]  }
  0x25   : > { %1932 = vmatmul.mubr.msk.bf16.gmra.mrb[4].mxu0 %vm494_vm2, %v2045_v12  ;;  %v2069_v36 = vld [vmem:[%s2200_s13 + $0x78] sm:$0xff]  }
  0x26   : > { %1964 = vmatmul.mubr.msk.bf16.gmra.mrb[4].mxu1 %vm494_vm2, %v2046_v13  ;;  %1935 = vmatprep.mubr.msk.bf16.mxu0 %vm494_vm2, %v2047_v14  ;;  %v2070_v37 = vld [vmem:[%s2200_s13 + $0xf8] sm:$0xff]  }
  0x27   : > { %1967 = vmatprep.mubr.msk.bf16.mxu1 %vm494_vm2, %v2048_v15 }
  0x2d   : > { %1936 = vmatmul.mubr.msk.bf16.gmra.mrb[8].mxu0 %vm494_vm2, %v2049_v16 }
  0x2e   : > { %1968 = vmatmul.mubr.msk.bf16.gmra.mrb[8].mxu1 %vm494_vm2, %v2050_v17  ;;  %1939 = vmatprep.mubr.msk.bf16.mxu0 %vm494_vm2, %v2051_v18 }
  0x2f   : > { %1971 = vmatprep.mubr.msk.bf16.mxu1 %vm494_vm2, %v2052_v19 }
  0x35   : > { %1940 = vmatmul.mubr.msk.bf16.gmra.mrb[12].mxu0 %vm494_vm2, %v2053_v20 }
  0x36   : > { %1972 = vmatmul.mubr.msk.bf16.gmra.mrb[12].mxu1 %vm494_vm2, %v2054_v21  ;;  %1943 = vmatprep.mubr.msk.bf16.mxu0 %vm494_vm2, %v2055_v22 }
  0x37   : > { %1975 = vmatprep.mubr.msk.bf16.mxu1 %vm494_vm2, %v2056_v23 }
  0x3d   : > { %1944 = vmatmul.mubr.msk.bf16.gmra.mrb[16].mxu0 %vm494_vm2, %v2057_v24 }
  0x3e   : > { %1976 = vmatmul.mubr.msk.bf16.gmra.mrb[16].mxu1 %vm494_vm2, %v2058_v25  ;;  %1947 = vmatprep.mubr.msk.bf16.mxu0 %vm494_vm2, %v2059_v26 }
  0x3f   : > { %1979 = vmatprep.mubr.msk.bf16.mxu1 %vm494_vm2, %v2060_v27 }
  0x45   : > { %1948 = vmatmul.mubr.msk.bf16.gmra.mrb[20].mxu0 %vm494_vm2, %v2061_v28 }
  0x46   : > { %1980 = vmatmul.mubr.msk.bf16.gmra.mrb[20].mxu1 %vm494_vm2, %v2062_v29  ;;  %1951 = vmatprep.mubr.msk.bf16.mxu0 %vm494_vm2, %v2063_v30 }
  0x47   : > { %1983 = vmatprep.mubr.msk.bf16.mxu1 %vm494_vm2, %v2064_v31 }
  0x4d   : > { %1952 = vmatmul.mubr.msk.bf16.gmra.mrb[24].mxu0 %vm494_vm2, %v2065_v32 }
  0x4e   : > { %1984 = vmatmul.mubr.msk.bf16.gmra.mrb[24].mxu1 %vm494_vm2, %v2066_v33  ;;  %1955 = vmatprep.mubr.msk.bf16.mxu0 %vm494_vm2, %v2067_v34 }
  0x4f   : > { %1987 = vmatprep.mubr.msk.bf16.mxu1 %vm494_vm2, %v2068_v35 }
  0x55   : > { %1956 = vmatmul.mubr.msk.bf16.gmra.mrb[28].mxu0 %vm494_vm2, %v2069_v36 }
  0x56   : > { %1988 = vmatmul.mubr.msk.bf16.gmra.mrb[28].mxu1 %vm494_vm2, %v2070_v37 }
  0xf0   : > { %v2273_v38 = vpop.f32.mrb[0].mxu0 }
  0xf1   : > { %v1827_v39 = vpack.c.bf16 %v2273_v38, %v2273_v38  ;;  %v2277_v40 = vpop.f32.mrb[0].mxu1  ;;  %v2279_v41 = vpop.f32.mrb[1].mxu0 }
  0xf2   : > { %v1859_v42 = vpack.c.bf16 %v2277_v40, %v2277_v40  ;;  %v1825_v43 = vpack.c.bf16 %v2279_v41, %v2279_v41  ;;  %v2285_v44 = vpop.f32.mrb[1].mxu1  ;;  %v2287_v45 = vpop.f32.mrb[2].mxu0 }
  0xf3   : > { %1146 = vst.msk [vmem:[%s2271_s22 + $0x8] sm:$0xf] %vm1143_vm3, %v1827_v39  ;;  %v1857_v46 = vpack.c.bf16 %v2285_v44, %v2285_v44  ;;  %v1828_v47 = vpack.c.bf16 %v2287_v45, %v2287_v45  ;;  %v2295_v48 = vpop.f32.mrb[2].mxu1  ;;  %v2297_v49 = vpop.f32.mrb[3].mxu0 }
  0xf4   : > { %1178 = vst.msk [vmem:[%s2271_s22 + $0x88] sm:$0xf] %vm1143_vm3, %v1859_v42  ;;  %1144 = vst.msk [vmem:[%s2271_s22] sm:$0xf] %vm1143_vm3, %v1825_v43  ;;  %v1860_v50 = vpack.c.bf16 %v2295_v48, %v2295_v48  ;;  %v1826_v51 = vpack.c.bf16 %v2297_v49, %v2297_v49  ;;  %v2307_v52 = vpop.f32.mrb[3].mxu1 }
  0xf5   : > { %1176 = vst.msk [vmem:[%s2271_s22 + $0x80] sm:$0xf] %vm1143_vm3, %v1857_v46  ;;  %1147 = vst.msk [vmem:[%s2271_s22 + $0xc] sm:$0xf] %vm1143_vm3, %v1828_v47  ;;  %v1858_v53 = vpack.c.bf16 %v2307_v52, %v2307_v52 }
  0xf6   : > { %1179 = vst.msk [vmem:[%s2271_s22 + $0x8c] sm:$0xf] %vm1143_vm3, %v1860_v50  ;;  %1145 = vst.msk [vmem:[%s2271_s22 + $0x4] sm:$0xf] %vm1143_vm3, %v1826_v51 }
  0xf7   : > { %1177 = vst.msk [vmem:[%s2271_s22 + $0x84] sm:$0xf] %vm1143_vm3, %v1858_v53 }
  0xf8   : > { %v2321_v54 = vpop.f32.mrb[4].mxu0 }
  0xf9   : > { %v1831_v55 = vpack.c.bf16 %v2321_v54, %v2321_v54  ;;  %v2325_v56 = vpop.f32.mrb[4].mxu1  ;;  %v2327_v57 = vpop.f32.mrb[5].mxu0 }
  0xfa   : > { %v1863_v58 = vpack.c.bf16 %v2325_v56, %v2325_v56  ;;  %v1829_v59 = vpack.c.bf16 %v2327_v57, %v2327_v57  ;;  %v2333_v60 = vpop.f32.mrb[5].mxu1  ;;  %v2335_v61 = vpop.f32.mrb[6].mxu0 }
  0xfb   : > { %1150 = vst.msk [vmem:[%s2271_s22 + $0x18] sm:$0xf] %vm1143_vm3, %v1831_v55  ;;  %v1861_v62 = vpack.c.bf16 %v2333_v60, %v2333_v60  ;;  %v1832_v63 = vpack.c.bf16 %v2335_v61, %v2335_v61  ;;  %v2343_v0 = vpop.f32.mrb[6].mxu1  ;;  %v2345_v1 = vpop.f32.mrb[7].mxu0 }
  0xfc   : > { %1182 = vst.msk [vmem:[%s2271_s22 + $0x98] sm:$0xf] %vm1143_vm3, %v1863_v58  ;;  %1148 = vst.msk [vmem:[%s2271_s22 + $0x10] sm:$0xf] %vm1143_vm3, %v1829_v59  ;;  %v1864_v2 = vpack.c.bf16 %v2343_v0, %v2343_v0  ;;  %v1830_v3 = vpack.c.bf16 %v2345_v1, %v2345_v1  ;;  %v2355_v4 = vpop.f32.mrb[7].mxu1 }
  0xfd   : > { %1180 = vst.msk [vmem:[%s2271_s22 + $0x90] sm:$0xf] %vm1143_vm3, %v1861_v62  ;;  %1151 = vst.msk [vmem:[%s2271_s22 + $0x1c] sm:$0xf] %vm1143_vm3, %v1832_v63  ;;  %v1862_v5 = vpack.c.bf16 %v2355_v4, %v2355_v4 }
  0xfe   : > { %1183 = vst.msk [vmem:[%s2271_s22 + $0x9c] sm:$0xf] %vm1143_vm3, %v1864_v2  ;;  %1149 = vst.msk [vmem:[%s2271_s22 + $0x14] sm:$0xf] %vm1143_vm3, %v1830_v3 }
  0xff   : > { %1181 = vst.msk [vmem:[%s2271_s22 + $0x94] sm:$0xf] %vm1143_vm3, %v1862_v5 }
 0x100   : > { %v2369_v6 = vpop.f32.mrb[8].mxu0 }
 0x101   : > { %v1835_v7 = vpack.c.bf16 %v2369_v6, %v2369_v6  ;;  %v2373_v8 = vpop.f32.mrb[8].mxu1  ;;  %v2375_v9 = vpop.f32.mrb[9].mxu0 }
 0x102   : > { %v1867_v10 = vpack.c.bf16 %v2373_v8, %v2373_v8  ;;  %v1833_v11 = vpack.c.bf16 %v2375_v9, %v2375_v9  ;;  %v2381_v12 = vpop.f32.mrb[9].mxu1  ;;  %v2383_v13 = vpop.f32.mrb[10].mxu0 }
 0x103   : > { %1154 = vst.msk [vmem:[%s2271_s22 + $0x28] sm:$0xf] %vm1143_vm3, %v1835_v7  ;;  %v1865_v14 = vpack.c.bf16 %v2381_v12, %v2381_v12  ;;  %v1836_v15 = vpack.c.bf16 %v2383_v13, %v2383_v13  ;;  %v2391_v16 = vpop.f32.mrb[10].mxu1  ;;  %v2393_v17 = vpop.f32.mrb[11].mxu0 }
 0x104   : > { %1186 = vst.msk [vmem:[%s2271_s22 + $0xa8] sm:$0xf] %vm1143_vm3, %v1867_v10  ;;  %1152 = vst.msk [vmem:[%s2271_s22 + $0x20] sm:$0xf] %vm1143_vm3, %v1833_v11  ;;  %v1868_v18 = vpack.c.bf16 %v2391_v16, %v2391_v16  ;;  %v1834_v19 = vpack.c.bf16 %v2393_v17, %v2393_v17  ;;  %v2403_v20 = vpop.f32.mrb[11].mxu1 }
 0x105   : > { %1184 = vst.msk [vmem:[%s2271_s22 + $0xa0] sm:$0xf] %vm1143_vm3, %v1865_v14  ;;  %1155 = vst.msk [vmem:[%s2271_s22 + $0x2c] sm:$0xf] %vm1143_vm3, %v1836_v15  ;;  %v1866_v21 = vpack.c.bf16 %v2403_v20, %v2403_v20 }
 0x106   : > { %1187 = vst.msk [vmem:[%s2271_s22 + $0xac] sm:$0xf] %vm1143_vm3, %v1868_v18  ;;  %1153 = vst.msk [vmem:[%s2271_s22 + $0x24] sm:$0xf] %vm1143_vm3, %v1834_v19 }
 0x107   : > { %1185 = vst.msk [vmem:[%s2271_s22 + $0xa4] sm:$0xf] %vm1143_vm3, %v1866_v21 }
 0x108   : > { %v2417_v22 = vpop.f32.mrb[12].mxu0 }
 0x109   : > { %v1839_v23 = vpack.c.bf16 %v2417_v22, %v2417_v22  ;;  %v2421_v24 = vpop.f32.mrb[12].mxu1  ;;  %v2423_v25 = vpop.f32.mrb[13].mxu0 }
 0x10a   : > { %v1871_v26 = vpack.c.bf16 %v2421_v24, %v2421_v24  ;;  %v1837_v27 = vpack.c.bf16 %v2423_v25, %v2423_v25  ;;  %v2429_v28 = vpop.f32.mrb[13].mxu1  ;;  %v2431_v29 = vpop.f32.mrb[14].mxu0 }
 0x10b   : > { %1158 = vst.msk [vmem:[%s2271_s22 + $0x38] sm:$0xf] %vm1143_vm3, %v1839_v23  ;;  %v1869_v30 = vpack.c.bf16 %v2429_v28, %v2429_v28  ;;  %v1840_v31 = vpack.c.bf16 %v2431_v29, %v2431_v29  ;;  %v2439_v32 = vpop.f32.mrb[14].mxu1  ;;  %v2441_v33 = vpop.f32.mrb[15].mxu0 }
 0x10c   : > { %1190 = vst.msk [vmem:[%s2271_s22 + $0xb8] sm:$0xf] %vm1143_vm3, %v1871_v26  ;;  %1156 = vst.msk [vmem:[%s2271_s22 + $0x30] sm:$0xf] %vm1143_vm3, %v1837_v27  ;;  %v1872_v34 = vpack.c.bf16 %v2439_v32, %v2439_v32  ;;  %v1838_v35 = vpack.c.bf16 %v2441_v33, %v2441_v33  ;;  %v2451_v36 = vpop.f32.mrb[15].mxu1 }
 0x10d   : > { %1188 = vst.msk [vmem:[%s2271_s22 + $0xb0] sm:$0xf] %vm1143_vm3, %v1869_v30  ;;  %1159 = vst.msk [vmem:[%s2271_s22 + $0x3c] sm:$0xf] %vm1143_vm3, %v1840_v31  ;;  %v1870_v37 = vpack.c.bf16 %v2451_v36, %v2451_v36 }
 0x10e   : > { %1191 = vst.msk [vmem:[%s2271_s22 + $0xbc] sm:$0xf] %vm1143_vm3, %v1872_v34  ;;  %1157 = vst.msk [vmem:[%s2271_s22 + $0x34] sm:$0xf] %vm1143_vm3, %v1838_v35 }
 0x10f   : > { %1189 = vst.msk [vmem:[%s2271_s22 + $0xb4] sm:$0xf] %vm1143_vm3, %v1870_v37 }
 0x110   : > { %v2465_v39 = vpop.f32.mrb[16].mxu0 }
 0x111   : > { %v1843_v42 = vpack.c.bf16 %v2465_v39, %v2465_v39  ;;  %v2469_v43 = vpop.f32.mrb[16].mxu1  ;;  %v2471_v46 = vpop.f32.mrb[17].mxu0 }
 0x112   : > { %3034 = vst [vmem:[#allocation2_spill] sm:$0xff] %v2469_v43  ;;  %v1875_v47 = vpack.c.bf16 %v2469_v43, %v2469_v43  ;;  %v1841_v50 = vpack.c.bf16 %v2471_v46, %v2471_v46  ;;  %v2477_v51 = vpop.f32.mrb[17].mxu1  ;;  %v2479_v53 = vpop.f32.mrb[18].mxu0 }
 0x113   : > { %1162 = vst.msk [vmem:[%s2271_s22 + $0x48] sm:$0xf] %vm1143_vm3, %v1843_v42  ;;  %v1873_v55 = vpack.c.bf16 %v2477_v51, %v2477_v51  ;;  %v1844_v58 = vpack.c.bf16 %v2479_v53, %v2479_v53  ;;  %v2487_v59 = vpop.f32.mrb[18].mxu1  ;;  %v2489_v62 = vpop.f32.mrb[19].mxu0 }
 0x114   : > { %3035 = vst [vmem:[#allocation3_spill] sm:$0xff] %v2487_v59  ;;  %1194 = vst.msk [vmem:[%s2271_s22 + $0xc8] sm:$0xf] %vm1143_vm3, %v1875_v47  ;;  %v1876_v63 = vpack.c.bf16 %v2487_v59, %v2487_v59  ;;  %v1842_v2 = vpack.c.bf16 %v2489_v62, %v2489_v62  ;;  %v2499_v3 = vpop.f32.mrb[19].mxu1 }
 0x115   : > { %1160 = vst.msk [vmem:[%s2271_s22 + $0x40] sm:$0xf] %vm1143_vm3, %v1841_v50  ;;  %1192 = vst.msk [vmem:[%s2271_s22 + $0xc0] sm:$0xf] %vm1143_vm3, %v1873_v55  ;;  %v1874_v5 = vpack.c.bf16 %v2499_v3, %v2499_v3 }
 0x116   : > { %1163 = vst.msk [vmem:[%s2271_s22 + $0x4c] sm:$0xf] %vm1143_vm3, %v1844_v58  ;;  %1195 = vst.msk [vmem:[%s2271_s22 + $0xcc] sm:$0xf] %vm1143_vm3, %v1876_v63 }
 0x117   : > { %1161 = vst.msk [vmem:[%s2271_s22 + $0x44] sm:$0xf] %vm1143_vm3, %v1842_v2  ;;  %1193 = vst.msk [vmem:[%s2271_s22 + $0xc4] sm:$0xf] %vm1143_vm3, %v1874_v5 }
 0x118   : > { %v2513_v7 = vpop.f32.mrb[20].mxu0 }
 0x119   : > { %v1847_v10 = vpack.c.bf16 %v2513_v7, %v2513_v7  ;;  %v2517_v11 = vpop.f32.mrb[20].mxu1  ;;  %v2519_v14 = vpop.f32.mrb[21].mxu0 }
 0x11a   : > { %3036 = vst [vmem:[#allocation4_spill] sm:$0xff] %v2517_v11  ;;  %v1879_v15 = vpack.c.bf16 %v2517_v11, %v2517_v11  ;;  %v1845_v18 = vpack.c.bf16 %v2519_v14, %v2519_v14  ;;  %v2525_v19 = vpop.f32.mrb[21].mxu1  ;;  %v2527_v21 = vpop.f32.mrb[22].mxu0 }
 0x11b   : > { %3037 = vst [vmem:[#allocation5_spill] sm:$0xff] %v2525_v19  ;;  %1166 = vst.msk [vmem:[%s2271_s22 + $0x58] sm:$0xf] %vm1143_vm3, %v1847_v10  ;;  %v1877_v23 = vpack.c.bf16 %v2525_v19, %v2525_v19  ;;  %v1848_v26 = vpack.c.bf16 %v2527_v21, %v2527_v21  ;;  %v2535_v27 = vpop.f32.mrb[22].mxu1  ;;  %v2537_v30 = vpop.f32.mrb[23].mxu0 }
 0x11c   : > { %3038 = vst [vmem:[#allocation6_spill] sm:$0xff] %v2535_v27  ;;  %1198 = vst.msk [vmem:[%s2271_s22 + $0xd8] sm:$0xf] %vm1143_vm3, %v1879_v15  ;;  %v1880_v31 = vpack.c.bf16 %v2535_v27, %v2535_v27  ;;  %v1846_v34 = vpack.c.bf16 %v2537_v30, %v2537_v30  ;;  %v2547_v35 = vpop.f32.mrb[23].mxu1 }
 0x11d   : > { %1164 = vst.msk [vmem:[%s2271_s22 + $0x50] sm:$0xf] %vm1143_vm3, %v1845_v18  ;;  %3039 = vst [vmem:[#allocation7_spill] sm:$0xff] %v2547_v35  ;;  %v1878_v37 = vpack.c.bf16 %v2547_v35, %v2547_v35 }
 0x11e   : > { %1196 = vst.msk [vmem:[%s2271_s22 + $0xd0] sm:$0xf] %vm1143_vm3, %v1877_v23  ;;  %1167 = vst.msk [vmem:[%s2271_s22 + $0x5c] sm:$0xf] %vm1143_vm3, %v1848_v26 }
 0x11f   : > { %1199 = vst.msk [vmem:[%s2271_s22 + $0xdc] sm:$0xf] %vm1143_vm3, %v1880_v31  ;;  %1165 = vst.msk [vmem:[%s2271_s22 + $0x54] sm:$0xf] %vm1143_vm3, %v1846_v34 }
 0x120   : > { %1197 = vst.msk [vmem:[%s2271_s22 + $0xd4] sm:$0xf] %vm1143_vm3, %v1878_v37  ;;  %v2561_v42 = vpop.f32.mrb[24].mxu0 }
 0x121   : > { %v1851_v47 = vpack.c.bf16 %v2561_v42, %v2561_v42  ;;  %v2565_v50 = vpop.f32.mrb[24].mxu1  ;;  %v2567_v55 = vpop.f32.mrb[25].mxu0 }
 0x122   : > { %3040 = vst [vmem:[#allocation8_spill] sm:$0xff] %v2565_v50  ;;  %v1883_v58 = vpack.c.bf16 %v2565_v50, %v2565_v50  ;;  %v1849_v63 = vpack.c.bf16 %v2567_v55, %v2567_v55  ;;  %v2573_v2 = vpop.f32.mrb[25].mxu1  ;;  %v2575_v5 = vpop.f32.mrb[26].mxu0 }
 0x123   : > { %3041 = vst [vmem:[#allocation9_spill] sm:$0xff] %v2573_v2  ;;  %1170 = vst.msk [vmem:[%s2271_s22 + $0x68] sm:$0xf] %vm1143_vm3, %v1851_v47  ;;  %v1881_v10 = vpack.c.bf16 %v2573_v2, %v2573_v2  ;;  %v1852_v15 = vpack.c.bf16 %v2575_v5, %v2575_v5  ;;  %v2583_v18 = vpop.f32.mrb[26].mxu1  ;;  %v2585_v23 = vpop.f32.mrb[27].mxu0 }
 0x124   : > { %3042 = vst [vmem:[#allocation10_spill] sm:$0xff] %v2583_v18  ;;  %1202 = vst.msk [vmem:[%s2271_s22 + $0xe8] sm:$0xf] %vm1143_vm3, %v1883_v58  ;;  %v1884_v26 = vpack.c.bf16 %v2583_v18, %v2583_v18  ;;  %v1850_v31 = vpack.c.bf16 %v2585_v23, %v2585_v23  ;;  %v2595_v34 = vpop.f32.mrb[27].mxu1 }
 0x125   : > { %1168 = vst.msk [vmem:[%s2271_s22 + $0x60] sm:$0xf] %vm1143_vm3, %v1849_v63  ;;  %3043 = vst [vmem:[#allocation11_spill] sm:$0xff] %v2595_v34  ;;  %v1882_v37 = vpack.c.bf16 %v2595_v34, %v2595_v34 }
 0x126   : > { %1200 = vst.msk [vmem:[%s2271_s22 + $0xe0] sm:$0xf] %vm1143_vm3, %v1881_v10  ;;  %1171 = vst.msk [vmem:[%s2271_s22 + $0x6c] sm:$0xf] %vm1143_vm3, %v1852_v15 }
 0x127   : > { %1203 = vst.msk [vmem:[%s2271_s22 + $0xec] sm:$0xf] %vm1143_vm3, %v1884_v26  ;;  %1169 = vst.msk [vmem:[%s2271_s22 + $0x64] sm:$0xf] %vm1143_vm3, %v1850_v31 }
 0x128   : > { %1201 = vst.msk [vmem:[%s2271_s22 + $0xe4] sm:$0xf] %vm1143_vm3, %v1882_v37  ;;  %v2609_v47 = vpop.f32.mrb[28].mxu0 }
 0x129   : > { %v1855_v58 = vpack.c.bf16 %v2609_v47, %v2609_v47  ;;  %v2613_v63 = vpop.f32.mrb[28].mxu1  ;;  %v2615_v10 = vpop.f32.mrb[29].mxu0 }
 0x12a   : > { %3044 = vst [vmem:[#allocation12_spill] sm:$0xff] %v2613_v63  ;;  %v1887_v15 = vpack.c.bf16 %v2613_v63, %v2613_v63  ;;  %v1853_v26 = vpack.c.bf16 %v2615_v10, %v2615_v10  ;;  %v2621_v31 = vpop.f32.mrb[29].mxu1  ;;  %v2623_v37 = vpop.f32.mrb[30].mxu0  ;;  %1211 = sbr.rel (%p1822_p7) target bundleno = 306 (0x132), region = 32 }
 0x12b   : > { %3045 = vst [vmem:[#allocation13_spill] sm:$0xff] %v2621_v31  ;;  %1174 = vst.msk [vmem:[%s2271_s22 + $0x78] sm:$0xf] %vm1143_vm3, %v1855_v58  ;;  %v1885_v18 = vpack.c.bf16 %v2621_v31, %v2621_v31  ;;  %v1856_v50 = vpack.c.bf16 %v2623_v37, %v2623_v37  ;;  %v2631_v34 = vpop.f32.mrb[30].mxu1  ;;  %v2633_v63 = vpop.f32.mrb[31].mxu0 }
 0x12c   : > { %3046 = vst [vmem:[#allocation14_spill] sm:$0xff] %v2631_v34  ;;  %1206 = vst.msk [vmem:[%s2271_s22 + $0xf8] sm:$0xf] %vm1143_vm3, %v1887_v15  ;;  %v1888_v2 = vpack.c.bf16 %v2631_v34, %v2631_v34  ;;  %v1854_v58 = vpack.c.bf16 %v2633_v63, %v2633_v63  ;;  %v2643_v27 = vpop.f32.mrb[31].mxu1  ;;  %v2112_v15 = vmov (!%p1822_p7), 0.0  }
 0x12d   : > { %1172 = vst.msk [vmem:[%s2271_s22 + $0x70] sm:$0xf] %vm1143_vm3, %v1853_v26  ;;  %3047 = vst [vmem:[#allocation15_spill] sm:$0xff] %v2643_v27  ;;  %v1886_v31 = vpack.c.bf16 %v2643_v27, %v2643_v27 }
 0x12e   : > { %1204 = vst.msk [vmem:[%s2271_s22 + $0xf0] sm:$0xf] %vm1143_vm3, %v1885_v18  ;;  %1175 = vst.msk [vmem:[%s2271_s22 + $0x7c] sm:$0xf] %vm1143_vm3, %v1856_v50 }
 0x12f   : > { %1207 = vst.msk [vmem:[%s2271_s22 + $0xfc] sm:$0xf] %vm1143_vm3, %v1888_v2  ;;  %1173 = vst.msk [vmem:[%s2271_s22 + $0x74] sm:$0xf] %vm1143_vm3, %v1854_v58 }
 0x130   : > { %1205 = vst.msk [vmem:[%s2271_s22 + $0xf4] sm:$0xf] %vm1143_vm3, %v1886_v31 }
 0x131   : > { %1213 = vst.msk [vmem:[%s2184_s30] sm:$0x1] %vm1212_vm4, %v2112_v15  ;;  %1214 = vst.msk [vmem:[%s2189_s7] sm:$0x1] %vm1212_vm4, %v2112_v15 }
 0x132 PF: > { %vm1216_vm5 = vcmask 261120   ;;  %vm1351_vm6 = vcmask 253952  }
 0x133   : > { %v1217_v50 = vsel %vm1216_vm5, %v2279_v41, 0.0  ;;  %v1218_v2 = vsel %vm1216_vm5, %v2297_v49, 0.0  ;;  %v1220_v18 = vsel %vm1216_vm5, %v2273_v38, 0.0  ;;  %v1222_v31 = vsel %vm1216_vm5, %v2287_v45, 0.0 }
 0x134   : > { %v1219_v26 = vadd.f32 %v1218_v2, %v1217_v50  ;;  %v1224_v34 = vsel %vm1216_vm5, %v2327_v57, 0.0  ;;  %v1226_v27 = vsel %vm1216_vm5, %v2345_v1, 0.0  ;;  %v1228_v35 = vsel %vm1216_vm5, %v2321_v54, 0.0 }
 0x135   : > { %v1230_v59 = vsel %vm1216_vm5, %v2335_v61, 0.0  ;;  %v1232_v2 = vsel %vm1216_vm5, %v2375_v9, 0.0 }
 0x136   : > { %v1221_v58 = vadd.f32 %v1220_v18, %v1219_v26  ;;  %v1234_v26 = vsel %vm1216_vm5, %v2393_v17, 0.0 }
 0x138   : > { %v1223_v15 = vadd.f32 %v1222_v31, %v1221_v58  ;;  %v1236_v58 = vsel %vm1216_vm5, %v2369_v6, 0.0 }
 0x13a   : > { %v1225_v11 = vadd.f32 %v1224_v34, %v1223_v15  ;;  %v1238_v15 = vsel %vm1216_vm5, %v2383_v13, 0.0 }
 0x13c   : > { %v1227_v19 = vadd.f32 %v1226_v27, %v1225_v11  ;;  %v1240_v27 = vsel %vm1216_vm5, %v2423_v25, 0.0 }
 0x13e   : > { %v1229_v50 = vadd.f32 %v1228_v35, %v1227_v19  ;;  %v1242_v35 = vsel %vm1216_vm5, %v2441_v33, 0.0 }
 0x140   : > { %v1231_v18 = vadd.f32 %v1230_v59, %v1229_v50  ;;  %v1244_v50 = vsel %vm1216_vm5, %v2417_v22, 0.0 }
 0x142   : > { %v1233_v31 = vadd.f32 %v1232_v2, %v1231_v18  ;;  %v1246_v18 = vsel %vm1216_vm5, %v2431_v29, 0.0 }
 0x144   : > { %v1235_v34 = vadd.f32 %v1234_v26, %v1233_v31  ;;  %v1248_v31 = vsel %vm1216_vm5, %v2471_v46, 0.0 }
 0x146   : > { %v1237_v11 = vadd.f32 %v1236_v58, %v1235_v34  ;;  %v1250_v34 = vsel %vm1216_vm5, %v2489_v62, 0.0 }
 0x148   : > { %v1239_v19 = vadd.f32 %v1238_v15, %v1237_v11  ;;  %v1252_v11 = vsel %vm1216_vm5, %v2465_v39, 0.0 }
 0x14a   : > { %v1241_v59 = vadd.f32 %v1240_v27, %v1239_v19  ;;  %v1354_v27 = vmul.f32 %v2279_v41, %v2279_v41  ;;  %v1355_v19 = vmul.f32 %v2297_v49, %v2297_v49  ;;  %v1358_v41 = vmul.f32 %v2327_v57, %v2327_v57 }
 0x14b   : > { %v1260_v57 = vsel %vm1216_vm5, %v2513_v7, 0.0 }
 0x14c   : > { %v1243_v2 = vadd.f32 %v1242_v35, %v1241_v59  ;;  %v1356_v35 = vmul.f32 %v2273_v38, %v2273_v38  ;;  %v1419_v49 = vsel %vm1216_vm5, %v1355_v19, 0.0  ;;  %v1425_v19 = vsel %vm1216_vm5, %v1358_v41, 0.0 }
 0x14e   : > { %v1245_v26 = vadd.f32 %v1244_v50, %v1243_v2  ;;  %v1254_v50 = vsel %vm1216_vm5, %v2479_v53, 0.0  ;;  %v1357_v2 = vmul.f32 %v2287_v45, %v2287_v45  ;;  %v1421_v38 = vsel %vm1216_vm5, %v1356_v35, 0.0 }
 0x14f   : > { %v1359_v45 = vmul.f32 %v2345_v1, %v2345_v1  ;;  %v1361_v1 = vmul.f32 %v2335_v61, %v2335_v61  ;;  %v1363_v61 = vmul.f32 %v2393_v17, %v2393_v17  ;;  %v1365_v17 = vmul.f32 %v2383_v13, %v2383_v13 }
 0x150   : > { %v1247_v58 = vadd.f32 %v1246_v18, %v1245_v26  ;;  %v1256_v26 = vsel %vm1216_vm5, %v2519_v14, 0.0  ;;  %v1367_v13 = vmul.f32 %v2441_v33, %v2441_v33  ;;  %v1369_v33 = vmul.f32 %v2431_v29, %v2431_v29 }
 0x151   : > { %v1371_v29 = vmul.f32 %v2489_v62, %v2489_v62  ;;  %v1373_v62 = vmul.f32 %v2479_v53, %v2479_v53  ;;  %v1375_v53 = vmul.f32 %v2537_v30, %v2537_v30 }
 0x152   : > { %v1249_v15 = vadd.f32 %v1248_v31, %v1247_v58  ;;  %v1418_v31 = vsel %vm1216_vm5, %v1354_v27, 0.0  ;;  %v1360_v27 = vmul.f32 %v2321_v54, %v2321_v54  ;;  %v1362_v54 = vmul.f32 %v2375_v9, %v2375_v9 }
 0x153   : > { %v1364_v9 = vmul.f32 %v2369_v6, %v2369_v6  ;;  %v1366_v6 = vmul.f32 %v2423_v25, %v2423_v25  ;;  %v1368_v25 = vmul.f32 %v2417_v22, %v2417_v22  ;;  %v1370_v22 = vmul.f32 %v2471_v46, %v2471_v46 }
 0x154   : > { %v1251_v59 = vadd.f32 %v1250_v34, %v1249_v15  ;;  %v1420_v34 = vadd.f32 %v1419_v49, %v1418_v31  ;;  %v1258_v15 = vsel %vm1216_vm5, %v2537_v30, 0.0  ;;  %v1264_v49 = vsel %vm1216_vm5, %v2567_v55, 0.0 }
 0x155   : > { %v1429_v41 = vsel %vm1216_vm5, %v1360_v27, 0.0  ;;  %v1372_v46 = vmul.f32 %v2465_v39, %v2465_v39  ;;  %v1374_v39 = vmul.f32 %v2519_v14, %v2519_v14  ;;  %v1376_v14 = vmul.f32 %v2513_v7, %v2513_v7 }
 0x156   : > { %v1253_v18 = vadd.f32 %v1252_v11, %v1251_v59  ;;  %v1423_v11 = vsel %vm1216_vm5, %v1357_v2, 0.0  ;;  %v1422_v43 = vadd.f32 %v1421_v38, %v1420_v34  ;;  %v1427_v2 = vsel %vm1216_vm5, %v1359_v45, 0.0 }
 0x157   : > { %v1431_v34 = vsel %vm1216_vm5, %v1361_v1, 0.0  ;;  %v1272_v1 = vsel %vm1216_vm5, %v2615_v10, 0.0  ;;  %v1377_v30 = vmul.f32 %v2527_v21, %v2527_v21  ;;  %v1378_v7 = vmul.f32 %v2567_v55, %v2567_v55 }
 0x158   : > { %v1255_v58 = vadd.f32 %v1254_v50, %v1253_v18  ;;  %v1424_v50 = vadd.f32 %v1423_v11, %v1422_v43  ;;  %v1262_v18 = vsel %vm1216_vm5, %v2527_v21, 0.0  ;;  %v1268_v11 = vsel %vm1216_vm5, %v2561_v42, 0.0 }
 0x159   : > { %v1379_v21 = vmul.f32 %v2585_v23, %v2585_v23  ;;  %v1380_v55 = vmul.f32 %v2561_v42, %v2561_v42  ;;  %v1382_v42 = vmul.f32 %v2615_v10, %v2615_v10  ;;  %v1384_v10 = vmul.f32 %v2609_v47, %v2609_v47 }
 0x15a   : > { %v1257_v59 = vadd.f32 %v1256_v26, %v1255_v58  ;;  %v1426_v31 = vadd.f32 %v1425_v19, %v1424_v50  ;;  %v1266_v58 = vsel %vm1216_vm5, %v2585_v23, 0.0  ;;  %v1270_v19 = vsel %vm1216_vm5, %v2575_v5, 0.0 }
 0x15b   : > { %v1381_v23 = vmul.f32 %v2575_v5, %v2575_v5  ;;  %v1383_v5 = vmul.f32 %v2633_v63, %v2633_v63 }
 0x15c   : > { %v1259_v35 = vadd.f32 %v1258_v15, %v1257_v59  ;;  %v1428_v43 = vadd.f32 %v1427_v2, %v1426_v31  ;;  %v1433_v59 = vsel %vm1216_vm5, %v1362_v54, 0.0  ;;  %v1437_v2 = vsel %vm1216_vm5, %v1364_v9, 0.0 }
 0x15d   : > { %v1439_v54 = vsel %vm1216_vm5, %v1365_v17, 0.0  ;;  %v1282_v17 = vsel %vm1216_vm5, %v2307_v52, 0.0 }
 0x15e   : > { %v1261_v26 = vadd.f32 %v1260_v57, %v1259_v35  ;;  %v1430_v45 = vadd.f32 %v1429_v41, %v1428_v43  ;;  %v1435_v35 = vsel %vm1216_vm5, %v1363_v61, 0.0  ;;  %v1276_v43 = vsel %vm1216_vm5, %v2609_v47, 0.0 }
 0x15f   : > { %v1386_v47 = vmul.f32 %v2285_v44, %v2285_v44 }
 0x160   : > { %v1263_v38 = vadd.f32 %v1262_v18, %v1261_v26  ;;  %v1432_v27 = vadd.f32 %v1431_v34, %v1430_v45  ;;  %v1443_v45 = vsel %vm1216_vm5, %v1367_v13, 0.0 }
 0x162   : > { %v1265_v15 = vadd.f32 %v1264_v49, %v1263_v38  ;;  %v1434_v18 = vadd.f32 %v1433_v59, %v1432_v27  ;;  %v1274_v49 = vsel %vm1216_vm5, %v2633_v63, 0.0  ;;  %v1280_v59 = vsel %vm1216_vm5, %v2285_v44, 0.0 }
 0x163   : > { %v1385_v63 = vmul.f32 %v2623_v37, %v2623_v37  ;;  %v1388_v44 = vmul.f32 %v2277_v40, %v2277_v40 }
 0x164   : > { %v1267_v57 = vadd.f32 %v1266_v58, %v1265_v15  ;;  %v1436_v31 = vadd.f32 %v1435_v35, %v1434_v18  ;;  %v1441_v58 = vsel %vm1216_vm5, %v1366_v6, 0.0  ;;  %v1278_v15 = vsel %vm1216_vm5, %v2623_v37, 0.0 }
 0x165   : > { %v1447_v35 = vsel %vm1216_vm5, %v1369_v33, 0.0  ;;  %v1449_v6 = vsel %vm1216_vm5, %v1370_v22, 0.0  ;;  %v1292_v33 = vsel %vm1216_vm5, %v2325_v56, 0.0  ;;  %v1459_v22 = vsel %vm1216_vm5, %v1375_v53, 0.0 }
 0x166   : > { %v1269_v50 = vadd.f32 %v1268_v11, %v1267_v57  ;;  %v1438_v38 = vadd.f32 %v1437_v2, %v1436_v31  ;;  %v1445_v57 = vsel %vm1216_vm5, %v1368_v25, 0.0  ;;  %v1286_v31 = vsel %vm1216_vm5, %v2295_v48, 0.0 }
 0x167   : > { %v1387_v37 = vmul.f32 %v2307_v52, %v2307_v52  ;;  %v1389_v52 = vmul.f32 %v2295_v48, %v2295_v48  ;;  %v1391_v48 = vmul.f32 %v2355_v4, %v2355_v4 }
 0x168   : > { %v1271_v26 = vadd.f32 %v1270_v19, %v1269_v50  ;;  %v1440_v34 = vadd.f32 %v1439_v54, %v1438_v38  ;;  %v1453_v38 = vsel %vm1216_vm5, %v1372_v46, 0.0 }
 0x16a   : > { %v1273_v41 = vadd.f32 %v1272_v1, %v1271_v26  ;;  %v1442_v9 = vadd.f32 %v1441_v58, %v1440_v34  ;;  %v1284_v1 = vsel %vm1216_vm5, %v2277_v40, 0.0  ;;  %v1290_v58 = vsel %vm1216_vm5, %v2355_v4, 0.0 }
 0x16b   : > { %v1390_v40 = vmul.f32 %v2333_v60, %v2333_v60  ;;  %v1393_v4 = vmul.f32 %v2343_v0, %v2343_v0 }
 0x16c   : > { %v1275_v61 = vadd.f32 %v1274_v49, %v1273_v41  ;;  %v1444_v19 = vadd.f32 %v1443_v45, %v1442_v9  ;;  %v1451_v49 = vsel %vm1216_vm5, %v1371_v29, 0.0  ;;  %v1288_v41 = vsel %vm1216_vm5, %v2333_v60, 0.0 }
 0x16d   : > { %v1457_v45 = vsel %vm1216_vm5, %v1374_v39, 0.0  ;;  %v1469_v39 = vsel %vm1216_vm5, %v1380_v55, 0.0  ;;  %v1483_v55 = vsel %vm1216_vm5, %v1387_v37, 0.0  ;;  %v1392_v60 = vmul.f32 %v2325_v56, %v2325_v56 }
 0x16e   : > { %v1277_v11 = vadd.f32 %v1276_v43, %v1275_v61  ;;  %v1446_v18 = vadd.f32 %v1445_v57, %v1444_v19  ;;  %v1455_v61 = vsel %vm1216_vm5, %v1373_v62, 0.0  ;;  %v1296_v19 = vsel %vm1216_vm5, %v2381_v12, 0.0 }
 0x16f   : > { %v1302_v62 = vsel %vm1216_vm5, %v2391_v16, 0.0  ;;  %v1394_v56 = vmul.f32 %v2381_v12, %v2381_v12  ;;  %v1396_v12 = vmul.f32 %v2373_v8, %v2373_v8 }
 0x170   : > { %v1279_v27 = vadd.f32 %v1278_v15, %v1277_v11  ;;  %v1448_v26 = vadd.f32 %v1447_v35, %v1446_v18  ;;  %v1463_v18 = vsel %vm1216_vm5, %v1377_v30, 0.0  ;;  %v1312_v30 = vsel %vm1216_vm5, %v2477_v51, 0.0 }
 0x171   : > { %v1497_v37 = vsel %vm1216_vm5, %v1394_v56, 0.0 }
 0x172   : > { %v1281_v50 = vadd.f32 %v1280_v59, %v1279_v27  ;;  %v1450_v54 = vadd.f32 %v1449_v6, %v1448_v26  ;;  %v1294_v59 = vsel %vm1216_vm5, %v2343_v0, 0.0  ;;  %v1300_v6 = vsel %vm1216_vm5, %v2373_v8, 0.0 }
 0x173   : > { %v1395_v0 = vmul.f32 %v2403_v20, %v2403_v20  ;;  %v1398_v8 = vmul.f32 %v2429_v28, %v2429_v28 }
 0x174   : > { %v1283_v2 = vadd.f32 %v1282_v17, %v1281_v50  ;;  %v1452_v25 = vadd.f32 %v1451_v49, %v1450_v54  ;;  %v1461_v17 = vsel %vm1216_vm5, %v1376_v14, 0.0  ;;  %v1298_v50 = vsel %vm1216_vm5, %v2403_v20, 0.0 }
 0x175   : > { %v1467_v49 = vsel %vm1216_vm5, %v1379_v21, 0.0  ;;  %v1481_v21 = vsel %vm1216_vm5, %v1386_v47, 0.0  ;;  %v1495_v47 = vsel %vm1216_vm5, %v1393_v4, 0.0  ;;  %v1397_v20 = vmul.f32 %v2391_v16, %v2391_v16 }
 0x176   : > { %v1285_v13 = vadd.f32 %v1284_v1, %v1283_v2  ;;  %v1454_v15 = vadd.f32 %v1453_v38, %v1452_v25  ;;  %v1465_v2 = vsel %vm1216_vm5, %v1378_v7, 0.0  ;;  %v1306_v25 = vsel %vm1216_vm5, %v2451_v36, 0.0 }
 0x177   : > { %v1479_v7 = vsel %vm1216_vm5, %v1385_v63, 0.0  ;;  %v1493_v63 = vsel %vm1216_vm5, %v1392_v60, 0.0  ;;  %v1399_v16 = vmul.f32 %v2451_v36, %v2451_v36  ;;  %v1401_v36 = vmul.f32 %v2439_v32, %v2439_v32 }
 0x178   : > { %v1287_v43 = vadd.f32 %v1286_v31, %v1285_v13  ;;  %v1456_v9 = vadd.f32 %v1455_v61, %v1454_v15  ;;  %v1473_v15 = vsel %vm1216_vm5, %v1382_v42, 0.0  ;;  %v1487_v42 = vsel %vm1216_vm5, %v1389_v52, 0.0 }
 0x179   : > { %v1501_v52 = vsel %vm1216_vm5, %v1396_v12, 0.0  ;;  %v1507_v60 = vsel %vm1216_vm5, %v1399_v16, 0.0 }
 0x17a   : > { %v1289_v34 = vadd.f32 %v1288_v41, %v1287_v43  ;;  %v1458_v27 = vadd.f32 %v1457_v45, %v1456_v9  ;;  %v1304_v41 = vsel %vm1216_vm5, %v2429_v28, 0.0  ;;  %v1310_v45 = vsel %vm1216_vm5, %v2439_v32, 0.0 }
 0x17b   : > { %v1400_v28 = vmul.f32 %v2421_v24, %v2421_v24 }
 0x17c   : > { %v1291_v11 = vadd.f32 %v1290_v58, %v1289_v34  ;;  %v1460_v35 = vadd.f32 %v1459_v22, %v1458_v27  ;;  %v1471_v58 = vsel %vm1216_vm5, %v1381_v23, 0.0  ;;  %v1308_v34 = vsel %vm1216_vm5, %v2421_v24, 0.0 }
 0x17d   : > { %v1477_v22 = vsel %vm1216_vm5, %v1384_v10, 0.0  ;;  %v1485_v23 = vsel %vm1216_vm5, %v1388_v44, 0.0  ;;  %v1491_v10 = vsel %vm1216_vm5, %v1391_v48, 0.0  ;;  %v1499_v44 = vsel %vm1216_vm5, %v1395_v0, 0.0 }
 0x17e   : > { %v1293_v57 = vadd.f32 %v1292_v33, %v1291_v11  ;;  %v1462_v46 = vadd.f32 %v1461_v17, %v1460_v35  ;;  %v1475_v11 = vsel %vm1216_vm5, %v1383_v5, 0.0  ;;  %v3048_v35 = vld [vmem:[#allocation2_spill] sm:$0xff]  ;;  %v1489_v5 = vsel %vm1216_vm5, %v1390_v40, 0.0 }
 0x17f   : > { %v1503_v40 = vsel %vm1216_vm5, %v1397_v20, 0.0  ;;  %v1505_v48 = vsel %vm1216_vm5, %v1398_v8, 0.0  ;;  %v1404_v32 = vmul.f32 %v3048_v35, %v3048_v35 }
 0x180   : > { %v1295_v29 = vadd.f32 %v1294_v59, %v1293_v57  ;;  %v1464_v31 = vadd.f32 %v1463_v18, %v1462_v46  ;;  %v3049_v46 = vld [vmem:[#allocation3_spill] sm:$0xff] }
 0x182   : > { %v1297_v1 = vadd.f32 %v1296_v19, %v1295_v29  ;;  %v1466_v54 = vadd.f32 %v1465_v2, %v1464_v31  ;;  %v1314_v19 = vsel %vm1216_vm5, %v2499_v3, 0.0  ;;  %v3050_v31 = vld [vmem:[#allocation5_spill] sm:$0xff] }
 0x184   : > { %v1299_v26 = vadd.f32 %v1298_v50, %v1297_v1  ;;  %v1468_v43 = vadd.f32 %v1467_v49, %v1466_v54  ;;  %v1316_v50 = vsel %vm1216_vm5, %v3048_v35, 0.0  ;;  %v3051_v54 = vld [vmem:[#allocation7_spill] sm:$0xff] }
 0x185   : > { %v1407_v35 = vmul.f32 %v3051_v54, %v3051_v54 }
 0x186   : > { %v1301_v13 = vadd.f32 %v1300_v6, %v1299_v26  ;;  %v1470_v61 = vadd.f32 %v1469_v39, %v1468_v43  ;;  %v1318_v6 = vsel %vm1216_vm5, %v3049_v46, 0.0  ;;  %v3052_v43 = vld [vmem:[#allocation4_spill] sm:$0xff] }
 0x188   : > { %v1303_v38 = vadd.f32 %v1302_v62, %v1301_v13  ;;  %v1472_v14 = vadd.f32 %v1471_v58, %v1470_v61  ;;  %v1320_v62 = vsel %vm1216_vm5, %v3050_v31, 0.0  ;;  %v3053_v61 = vld [vmem:[#allocation6_spill] sm:$0xff] }
 0x189   : > { %v1409_v20 = vmul.f32 %v3053_v61, %v3053_v61 }
 0x18a   : > { %v1305_v53 = vadd.f32 %v1304_v41, %v1303_v38  ;;  %v1474_v59 = vadd.f32 %v1473_v15, %v1472_v14  ;;  %v1322_v41 = vsel %vm1216_vm5, %v3051_v54, 0.0  ;;  %v3054_v14 = vld [vmem:[#allocation9_spill] sm:$0xff] }
 0x18c   : > { %v1307_v33 = vadd.f32 %v1306_v25, %v1305_v53  ;;  %v1476_v27 = vadd.f32 %v1475_v11, %v1474_v59  ;;  %v1324_v25 = vsel %vm1216_vm5, %v3052_v43, 0.0  ;;  %v3055_v59 = vld [vmem:[#allocation11_spill] sm:$0xff] }
 0x18d   : > { %v1411_v8 = vmul.f32 %v3055_v59, %v3055_v59 }
 0x18e   : > { %v1309_v9 = vadd.f32 %v1308_v34, %v1307_v33  ;;  %v1478_v29 = vadd.f32 %v1477_v22, %v1476_v27  ;;  %v1326_v34 = vsel %vm1216_vm5, %v3053_v61, 0.0  ;;  %v3056_v27 = vld [vmem:[#allocation8_spill] sm:$0xff] }
 0x18f   : > { %v1412_v61 = vmul.f32 %v3056_v27, %v3056_v27  ;;  %v1531_v16 = vsel %vm1216_vm5, %v1411_v8, 0.0 }
 0x190   : > { %v1311_v57 = vadd.f32 %v1310_v45, %v1309_v9  ;;  %v1480_v1 = vadd.f32 %v1479_v7, %v1478_v29  ;;  %v1328_v45 = vsel %vm1216_vm5, %v3054_v14, 0.0  ;;  %v3057_v29 = vld [vmem:[#allocation10_spill] sm:$0xff] }
 0x192   : > { %v1313_v17 = vadd.f32 %v1312_v30, %v1311_v57  ;;  %v1482_v26 = vadd.f32 %v1481_v21, %v1480_v1  ;;  %v1330_v30 = vsel %vm1216_vm5, %v3055_v59, 0.0  ;;  %v3058_v1 = vld [vmem:[#allocation13_spill] sm:$0xff]  ;;  %v1533_v59 = vsel %vm1216_vm5, %v1412_v61, 0.0 }
 0x194   : > { %v1315_v18 = vadd.f32 %v1314_v19, %v1313_v17  ;;  %v1484_v13 = vadd.f32 %v1483_v55, %v1482_v26  ;;  %v1332_v19 = vsel %vm1216_vm5, %v3056_v27, 0.0  ;;  %v3059_v26 = vld [vmem:[#allocation15_spill] sm:$0xff] }
 0x196   : > { %v1317_v2 = vadd.f32 %v1316_v50, %v1315_v18  ;;  %v1486_v38 = vadd.f32 %v1485_v23, %v1484_v13  ;;  %v1334_v50 = vsel %vm1216_vm5, %v3057_v29, 0.0  ;;  %v3060_v13 = vld [vmem:[#allocation12_spill] sm:$0xff] }
 0x198   : > { %v1319_v49 = vadd.f32 %v1318_v6, %v1317_v2  ;;  %v1488_v53 = vadd.f32 %v1487_v42, %v1486_v38  ;;  %v1336_v6 = vsel %vm1216_vm5, %v3058_v1, 0.0  ;;  %v3061_v38 = vld [vmem:[#allocation14_spill] sm:$0xff] }
 0x19a   : > { %v1321_v39 = vadd.f32 %v1320_v62, %v1319_v49  ;;  %v1490_v33 = vadd.f32 %v1489_v5, %v1488_v53  ;;  %v1338_v62 = vsel %vm1216_vm5, %v3059_v26, 0.0  ;;  %v1402_v53 = vmul.f32 %v2477_v51, %v2477_v51 }
 0x19b   : > { %v1405_v51 = vmul.f32 %v3049_v46, %v3049_v46  ;;  %v1215_v46 = vld [vmem:[%s2184_s30] sm:$0x1] }
 0x19c   : > { %v1323_v58 = vadd.f32 %v1322_v41, %v1321_v39  ;;  %v1492_v9 = vadd.f32 %v1491_v10, %v1490_v33  ;;  %v1340_v41 = vsel %vm1216_vm5, %v3060_v13, 0.0  ;;  %v1403_v10 = vmul.f32 %v2499_v3, %v2499_v3 }
 0x19d   : > { %v1513_v56 = vsel %vm1216_vm5, %v1402_v53, 0.0  ;;  %v1406_v3 = vmul.f32 %v3050_v31, %v3050_v31 }
 0x19e   : > { %v1325_v15 = vadd.f32 %v1324_v25, %v1323_v58  ;;  %v1494_v57 = vadd.f32 %v1493_v63, %v1492_v9  ;;  %v1342_v25 = vsel %vm1216_vm5, %v3061_v38, 0.0  ;;  %v1515_v9 = vsel %vm1216_vm5, %v1403_v10, 0.0  ;;  %v1353_v10 = vld [vmem:[%s2189_s7] sm:$0x1] }
 0x1a0   : > { %v1327_v11 = vadd.f32 %v1326_v34, %v1325_v15  ;;  %v1496_v17 = vadd.f32 %v1495_v47, %v1494_v57  ;;  %v1509_v34 = vsel %vm1216_vm5, %v1400_v28, 0.0  ;;  %v1511_v15 = vsel %vm1216_vm5, %v1401_v36, 0.0 }
 0x1a1   : > { %v1517_v47 = vsel %vm1216_vm5, %v1404_v32, 0.0 }
 0x1a2   : > { %v1329_v22 = vadd.f32 %v1328_v45, %v1327_v11  ;;  %v1498_v18 = vadd.f32 %v1497_v37, %v1496_v17  ;;  %v1521_v17 = vsel %vm1216_vm5, %v1406_v3, 0.0 }
 0x1a4   : > { %v1331_v7 = vadd.f32 %v1330_v30, %v1329_v22  ;;  %v1500_v2 = vadd.f32 %v1499_v44, %v1498_v18  ;;  %v1523_v44 = vsel %vm1216_vm5, %v1407_v35, 0.0  ;;  %v1410_v18 = vmul.f32 %v3054_v14, %v3054_v14 }
 0x1a5   : > { %v1413_v14 = vmul.f32 %v3057_v29, %v3057_v29 }
 0x1a6   : > { %v1333_v21 = vadd.f32 %v1332_v19, %v1331_v7  ;;  %v1502_v49 = vadd.f32 %v1501_v52, %v1500_v2  ;;  %v1519_v19 = vsel %vm1216_vm5, %v1405_v51, 0.0  ;;  %v1408_v7 = vmul.f32 %v3052_v43, %v3052_v43 }
 0x1a7   : > { %v1527_v52 = vsel %vm1216_vm5, %v1409_v20, 0.0  ;;  %v1529_v2 = vsel %vm1216_vm5, %v1410_v18, 0.0  ;;  %v1535_v27 = vsel %vm1216_vm5, %v1413_v14, 0.0 }
 0x1a8   : > { %v1335_v55 = vadd.f32 %v1334_v50, %v1333_v21  ;;  %v1504_v39 = vadd.f32 %v1503_v40, %v1502_v49 }
 0x1aa   : > { %v1337_v23 = vadd.f32 %v1336_v6, %v1335_v55  ;;  %v1506_v58 = vadd.f32 %v1505_v48, %v1504_v39  ;;  %v1525_v6 = vsel %vm1216_vm5, %v1408_v7, 0.0  ;;  %v1416_v48 = vmul.f32 %v3060_v13, %v3060_v13 }
 0x1ab   : > { %v1417_v39 = vmul.f32 %v3061_v38, %v3061_v38 }
 0x1ac   : > { %v1339_v42 = vadd.f32 %v1338_v62, %v1337_v23  ;;  %v1508_v4 = vadd.f32 %v1507_v60, %v1506_v58  ;;  %v1414_v23 = vmul.f32 %v3058_v1, %v3058_v1  ;;  %v1541_v36 = vsel %vm1216_vm5, %v1416_v48, 0.0 }
 0x1ad   : > { %v1543_v60 = vsel %vm1216_vm5, %v1417_v39, 0.0 }
 0x1ae   : > { %v1341_v5 = vadd.f32 %v1340_v41, %v1339_v42  ;;  %v1510_v45 = vadd.f32 %v1509_v34, %v1508_v4  ;;  %v1415_v41 = vmul.f32 %v3059_v26, %v3059_v26  ;;  %v1537_v29 = vsel %vm1216_vm5, %v1414_v23, 0.0 }
 0x1b0   : > { %v1343_v24 = vadd.f32 %v1342_v25, %v1341_v5  ;;  %v1512_v11 = vadd.f32 %v1511_v15, %v1510_v45  ;;  %v1539_v1 = vsel %vm1216_vm5, %v1415_v41, 0.0 }
 0x1b2   : > { %v1344_v33 = vrot.slane %v1343_v24, 4  ;;  %v1514_v0 = vadd.f32 %v1513_v56, %v1512_v11 }
 0x1b4   : > { %v1345_v63 = vadd.f32 %v1344_v33, %v1343_v24  ;;  %v1516_v57 = vadd.f32 %v1515_v9, %v1514_v0 }
 0x1b6   : > { %v1346_v30 = vrot.slane %v1345_v63, 2  ;;  %v1518_v37 = vadd.f32 %v1517_v47, %v1516_v57 }
 0x1b8   : > { %v1347_v22 = vadd.f32 %v1346_v30, %v1345_v63  ;;  %v1520_v31 = vadd.f32 %v1519_v19, %v1518_v37 }
 0x1ba   : > { %v1348_v12 = vrot.slane %v1347_v22, 1  ;;  %v1522_v21 = vadd.f32 %v1521_v17, %v1520_v31 }
 0x1bc   : > { %v1349_v50 = vadd.f32 %v1348_v12, %v1347_v22  ;;  %v1524_v43 = vadd.f32 %v1523_v44, %v1522_v21 }
 0x1be   : > { %v1350_v54 = vadd.f32 %v1349_v50, %v1215_v46  ;;  %v1526_v55 = vadd.f32 %v1525_v6, %v1524_v43 }
 0x1c0   : > { %1352 = vst.msk [vmem:[%s2184_s30] sm:$0x1] %vm1351_vm6, %v1350_v54  ;;  %v1528_v62 = vadd.f32 %v1527_v52, %v1526_v55 }
 0x1c2   : > { %v1530_v40 = vadd.f32 %v1529_v2, %v1528_v62 }
 0x1c4   : > { %v1532_v49 = vadd.f32 %v1531_v16, %v1530_v40 }
 0x1c6   : > { %v1534_v28 = vadd.f32 %v1533_v59, %v1532_v49 }
 0x1c8   : > { %v1536_v42 = vadd.f32 %v1535_v27, %v1534_v28 }
 0x1ca   : > { %v1538_v25 = vadd.f32 %v1537_v29, %v1536_v42 }
 0x1cc   : > { %v1540_v26 = vadd.f32 %v1539_v1, %v1538_v25 }
 0x1ce   : > { %v1542_v5 = vadd.f32 %v1541_v36, %v1540_v26 }
 0x1d0   : > { %v1544_v58 = vadd.f32 %v1543_v60, %v1542_v5 }
 0x1d2   : > { %v1545_v53 = vrot.slane %v1544_v58, 4 }
 0x1d4   : > { %v1546_v13 = vadd.f32 %v1545_v53, %v1544_v58 }
 0x1d6   : > { %v1547_v34 = vrot.slane %v1546_v13, 2 }
 0x1d8   : > { %v1548_v24 = vadd.f32 %v1547_v34, %v1546_v13 }
 0x1da   : > { %v1549_v4 = vrot.slane %v1548_v24, 1 }
 0x1dc   : > { %v1550_v15 = vadd.f32 %v1549_v4, %v1548_v24 }
 0x1de   : > { %v1551_v33 = vadd.f32 %v1550_v15, %v1353_v10 }
 0x1e0   : > { %1552 = vst.msk [vmem:[%s2189_s7] sm:$0x1] %vm1351_vm6, %v1551_v33 }
 0x1e1 PF: > { %s15_s19 = sadd.s32 1, %s2109_s19   ;;  %s3062_s15 = smov %s2101_s17 }
 0x1e2   : > { %p12_p8 = scmp.ge.s32.totalorder %s15_s19, 6   ;;  %s3063_s16 = smov %s2105_s18 }
 0x1e3   : > { %s3064_s17 = smov %s3067_s20  ;;  %s3065_s18 = smov %s3071_s21 }
 0x1e4   :  { %14 = sbr.rel (!%p12_p8) target bundleno = 3 (0x3), region = 86 }

// kernel: _conv_block_core.3
= control target key start
LH: loop header
LB: loop body
LE: loop exit
PB: predicated region body
PF: predicated region fallthrough
CT: control target
= control target key end

     0   :  { %8 = vsyncpa [#allocation3], 0  ;;  %s1877_s0 = inlined_call_operand.vmem [shape: bf16[2048,32], index: 0, kind: input, shape index: {}]   ;;  %s1878_s1 = inlined_call_operand.vmem [shape: f32[1,32], index: 1, kind: input, shape index: {}]   ;;  %s1879_s2 = inlined_call_operand.vmem [shape: f32[1,32], index: 2, kind: input, shape index: {}]   ;;  %s1880_s3 = inlined_call_operand.hbm [shape: bf16[2048,32], index: 3, kind: output, shape index: {}]  }
   0x1   :  { %10 = vsyncpa [#allocation3 + $0x1], 0  ;;  %s1463_s12 = smov 0   ;;  %s1465_s13 = smov 0  }
   0x2   :  { %s1467_s14 = smov 0   ;;  %s1469_s15 = smov 0  }
   0x3 LB: > { %s1484_s16 = sadd.s32 4294967295, %s1438_s15   ;;  %s1031_s17 = sadd.s32 4294967294, %s1438_s15   ;;  %s1438_s15 = sphi %s1469_s15, %s1886_s15   ;;  %s1434_s14 = sphi %s1467_s14, %s1885_s14   ;;  %s1430_s13 = sphi %s1465_s13, %s1884_s13   ;;  %s1426_s12 = sphi %s1463_s12, %s1883_s12  }
   0x4   : > { %s1488_s18 = sadd.s32 1, %s1438_s15   ;;  %s91_s19 = sadd.s32 1, %s1434_s14 }
   0x5   : > { %s88_s20 = ssub.s32 %s1438_s15, %s1488_s18  ;;  %p101_p0 = scmp.ne.s32.totalorder %s1434_s14, %s1430_s13 }
   0x6   : > { %p89_p1 = scmp.eq.s32.totalorder %s88_s20, 0  ;;  %p102_p2 = scmp.eq.s32.totalorder %s1484_s16, 3 }
   0x7   : > { %p107_p3 = scmp.ne.s32.totalorder %s1430_s13, %s1426_s12  ;;  %p108_p4 = scmp.eq.s32.totalorder %s1031_s17, 3 }
   0x8   : > { %s1499_s21 = scalar_select %p89_p1, %s1434_s14, %s91_s19  }
   0x9   : > { %p1501_p5 = por %p102_p2, %p101_p0  ;;  %p1505_p6 = por %p108_p4, %p107_p3 }
   0xa   : > { %p1034_p7 = scmp.ge.s32.totalorder %s1438_s15, 1  ;;  %p141_p8 = scmp.lt.s32.totalorder %s1438_s15, 5 }
   0xc   : > { %p142_p9 = pnand %p1034_p7, %p141_p8 }
   0xd   : > { %s1036_s24 = sshll.u32 (!%p142_p9), %s1484_s16, 6  ;;  %v1520_v0 = vld [vmem:[%s1878_s1] ss:$0 sm:$0xff] (!%p142_p9)  ;;  %vm890_vm0 = vcmask (!%p142_p9), 257024   ;;  %s162_s6 = sand.u32 (!%p142_p9), 1, %s1430_s13  }
   0xe   : > { %145 = sbr.rel (%p142_p9) target bundleno = 157 (0x9d), region = 32  ;;  %p166_p10 = scmp.lt.s32.totalorder (!%p142_p9), %s1036_s24, 255  ;;  %v1529_v9 = vld [vmem:[%s1879_s2] ss:$0 sm:$0xff] (!%p142_p9) }
   0xf   : > { %s1035_s7 = sshll.u32 (!%p142_p9), %s162_s6, 8  ;;  %s1173_s19 = sshll.u32 (!%p142_p9), %s1484_s16, 12 }
  0x10   : > { %s1552_s8 = scalar_lea.vmem (!%p142_p9), [#allocation2], %s1035_s7  ;;  %s1826_s26 = scalar_lea.hbm (!%p142_p9), %s1880_s3, %s1173_s19 }
  0x11   : > { %s969_s20 = sshll.u32 (!%p142_p9), %s1552_s8, 4  ;;  %s1836_s16 = scalar_lea.sflag (!%p142_p9), [#allocation3], %s162_s6  ;;  %s1828_s20 = int_to_ptr.vmem [resolvable:$true] %s969_s20 }
  0x12   : > { %s1376_s27 = scalar_lea.vmem (!%p142_p9), %s1828_s20, 4096 }
  0x13   : > { %p1377_p11 = scmp.ne.s32.totalorder (!%p142_p9), %s1828_s20, %s1376_s27 }
  0x15   : > { %s1888_s24 = smov (!%p166_p10, %s1036_s24), 255  ;;  %p1378_p12 = pnand %p1377_p11, %p1501_p5 }
  0x16   : > { %s1037_s25 = sshll.u32 %s1888_s24, 2 }
  0x17   : > { %s1515_s28 = scalar_lea.vmem %s1877_s0, %s1037_s25  ;;  %p1379_p13 = pneg %p1378_p12 }
  0x18   : > { %v1175_v1 = vld [vmem:[%s1515_s28] sm:$0xff]   ;;  %v1302_v2 = vld [vmem:[%s1515_s28 + $0x8] sm:$0xff]   ;;  %v1303_v3 = vld [vmem:[%s1515_s28 + $0x10] sm:$0xff]  }
  0x19   : > { %v1176_v4 = vunpack.c.l.bf16 %v1175_v1  ;;  %v1177_v5 = vunpack.c.h.bf16 %v1175_v1  ;;  %v1180_v6 = vunpack.c.l.bf16 %v1302_v2  ;;  %v1181_v7 = vunpack.c.h.bf16 %v1302_v2  ;;  %v1304_v8 = vld [vmem:[%s1515_s28 + $0x18] sm:$0xff]   ;;  %v1305_v41 = vld [vmem:[%s1515_s28 + $0x20] sm:$0xff]   ;;  %v1306_v45 = vld [vmem:[%s1515_s28 + $0x28] sm:$0xff]  }
  0x1a   : > { %v1184_v10 = vunpack.c.l.bf16 %v1303_v3  ;;  %v1185_v11 = vunpack.c.h.bf16 %v1303_v3  ;;  %v1188_v12 = vunpack.c.l.bf16 %v1304_v8  ;;  %v1189_v13 = vunpack.c.h.bf16 %v1304_v8  ;;  %v1307_v56 = vld [vmem:[%s1515_s28 + $0x30] sm:$0xff]   ;;  %v1308_v57 = vld [vmem:[%s1515_s28 + $0x38] sm:$0xff]  }
  0x1b   : > { %v307_v14 = vmul.f32 %v1176_v4, %v1520_v0  ;;  %v308_v15 = vmul.f32 %v1177_v5, %v1520_v0  ;;  %v309_v16 = vmul.f32 %v1180_v6, %v1520_v0  ;;  %v310_v17 = vmul.f32 %v1181_v7, %v1520_v0 }
  0x1c   : > { %v311_v18 = vmul.f32 %v1184_v10, %v1520_v0  ;;  %v312_v19 = vmul.f32 %v1185_v11, %v1520_v0  ;;  %v313_v20 = vmul.f32 %v1188_v12, %v1520_v0  ;;  %v314_v21 = vmul.f32 %v1189_v13, %v1520_v0 }
  0x1d   : > { %v378_v22 = vadd.f32 %v1529_v9, %v307_v14  ;;  %v379_v23 = vadd.f32 %v1529_v9, %v308_v15  ;;  %v380_v24 = vadd.f32 %v1529_v9, %v309_v16  ;;  %v381_v25 = vadd.f32 %v1529_v9, %v310_v17 }
  0x1e   : > { %v382_v26 = vadd.f32 %v1529_v9, %v311_v18  ;;  %v383_v27 = vadd.f32 %v1529_v9, %v312_v19  ;;  %v384_v28 = vadd.f32 %v1529_v9, %v313_v20  ;;  %v385_v29 = vadd.f32 %v1529_v9, %v314_v21 }
  0x1f   : > { %vm442_vm1 = vcmp.ge.f32.partialorder %v378_v22, 0.0  ;;  %v506_v30 = vmul.f32 0.1, %v378_v22  ;;  %vm443_vm2 = vcmp.ge.f32.partialorder %v379_v23, 0.0  ;;  %v507_v31 = vmul.f32 0.1, %v379_v23 }
  0x20   : > { %vm444_vm3 = vcmp.ge.f32.partialorder %v380_v24, 0.0  ;;  %v508_v32 = vmul.f32 0.1, %v380_v24  ;;  %vm445_vm4 = vcmp.ge.f32.partialorder %v381_v25, 0.0  ;;  %v509_v33 = vmul.f32 0.1, %v381_v25 }
  0x21   : > { %v570_v34 = vsel %vm442_vm1, %v378_v22, %v506_v30  ;;  %v571_v35 = vsel %vm443_vm2, %v379_v23, %v507_v31  ;;  %vm446_vm5 = vcmp.ge.f32.partialorder %v382_v26, 0.0  ;;  %v510_v36 = vmul.f32 0.1, %v382_v26 }
  0x22   : > { %v1109_v37 = vpack.c.bf16 %v570_v34, %v570_v34  ;;  %v1110_v38 = vpack.c.bf16 %v571_v35, %v571_v35  ;;  %v572_v39 = vsel %vm444_vm3, %v380_v24, %v508_v32  ;;  %v573_v40 = vsel %vm445_vm4, %v381_v25, %v509_v33  ;;  %v1309_v24 = vld [vmem:[%s1515_s28 + $0x40] sm:$0xff]  }
  0x23   : > { %v1111_v42 = vpack.c.bf16 %v572_v39, %v572_v39  ;;  %v1112_v43 = vpack.c.bf16 %v573_v40, %v573_v40  ;;  %v574_v44 = vsel %vm446_vm5, %v382_v26, %v510_v36  ;;  %vm447_vm6 = vcmp.ge.f32.partialorder %v383_v27, 0.0 }
  0x24   : > { %891 = vst.msk [vmem:[%s1552_s8] sm:$0xf] %vm890_vm0, %v1109_v37  ;;  %892 = vst.msk [vmem:[%s1552_s8 + $0x4] sm:$0xf] %vm890_vm0, %v1110_v38  ;;  %v1113_v46 = vpack.c.bf16 %v574_v44, %v574_v44  ;;  %v511_v47 = vmul.f32 0.1, %v383_v27  ;;  %v1192_v50 = vunpack.c.l.bf16 %v1305_v41  ;;  %v1193_v51 = vunpack.c.h.bf16 %v1305_v41 }
  0x25   : > { %vm448_vm7 = vcmp.ge.f32.partialorder %v384_v28, 0.0  ;;  %v512_v48 = vmul.f32 0.1, %v384_v28  ;;  %893 = vst.msk [vmem:[%s1552_s8 + $0x8] sm:$0xf] %vm890_vm0, %v1111_v42  ;;  %vm449_vm8 = vcmp.ge.f32.partialorder %v385_v29, 0.0  ;;  %v1196_v54 = vunpack.c.l.bf16 %v1306_v45 }
  0x26   : > { %894 = vst.msk [vmem:[%s1552_s8 + $0xc] sm:$0xf] %vm890_vm0, %v1112_v43  ;;  %v513_v49 = vmul.f32 0.1, %v385_v29  ;;  %895 = vst.msk [vmem:[%s1552_s8 + $0x10] sm:$0xf] %vm890_vm0, %v1113_v46  ;;  %v575_v52 = vsel %vm447_vm6, %v383_v27, %v511_v47  ;;  %v1197_v55 = vunpack.c.h.bf16 %v1306_v45  ;;  %v315_v61 = vmul.f32 %v1192_v50, %v1520_v0 }
  0x27   : > { %v576_v53 = vsel %vm448_vm7, %v384_v28, %v512_v48  ;;  %v1114_v58 = vpack.c.bf16 %v575_v52, %v575_v52  ;;  %v316_v63 = vmul.f32 %v1193_v51, %v1520_v0  ;;  %v317_v1 = vmul.f32 %v1196_v54, %v1520_v0  ;;  %v1310_v28 = vld [vmem:[%s1515_s28 + $0x48] sm:$0xff]   ;;  %v1311_v48 = vld [vmem:[%s1515_s28 + $0x50] sm:$0xff]  }
  0x28   : > { %v1115_v59 = vpack.c.bf16 %v576_v53, %v576_v53  ;;  %v577_v60 = vsel %vm449_vm8, %v385_v29, %v513_v49  ;;  %v318_v2 = vmul.f32 %v1197_v55, %v1520_v0  ;;  %v386_v3 = vadd.f32 %v1529_v9, %v315_v61 }
  0x29   : > { %v1116_v62 = vpack.c.bf16 %v577_v60, %v577_v60  ;;  %896 = vst.msk [vmem:[%s1552_s8 + $0x14] sm:$0xf] %vm890_vm0, %v1114_v58  ;;  %v1200_v4 = vunpack.c.l.bf16 %v1307_v56  ;;  %v1201_v5 = vunpack.c.h.bf16 %v1307_v56  ;;  %v1204_v6 = vunpack.c.l.bf16 %v1308_v57 }
  0x2a   : > { %897 = vst.msk [vmem:[%s1552_s8 + $0x18] sm:$0xf] %vm890_vm0, %v1115_v59  ;;  %v387_v7 = vadd.f32 %v1529_v9, %v316_v63  ;;  %v388_v8 = vadd.f32 %v1529_v9, %v317_v1  ;;  %v389_v10 = vadd.f32 %v1529_v9, %v318_v2  ;;  %v1205_v11 = vunpack.c.h.bf16 %v1308_v57 }
  0x2b   : > { %898 = vst.msk [vmem:[%s1552_s8 + $0x1c] sm:$0xf] %vm890_vm0, %v1116_v62  ;;  %vm450_vm9 = vcmp.ge.f32.partialorder %v386_v3, 0.0  ;;  %v514_v12 = vmul.f32 0.1, %v386_v3  ;;  %v319_v13 = vmul.f32 %v1200_v4, %v1520_v0  ;;  %v320_v14 = vmul.f32 %v1201_v5, %v1520_v0  ;;  %v1312_v4 = vld [vmem:[%s1515_s28 + $0x58] sm:$0xff]  }
  0x2c   : > { %vm451_vm10 = vcmp.ge.f32.partialorder %v387_v7, 0.0  ;;  %v515_v15 = vmul.f32 0.1, %v387_v7  ;;  %vm452_vm11 = vcmp.ge.f32.partialorder %v388_v8, 0.0  ;;  %v516_v16 = vmul.f32 0.1, %v388_v8 }
  0x2d   : > { %v578_v17 = vsel %vm450_vm9, %v386_v3, %v514_v12  ;;  %vm453_vm12 = vcmp.ge.f32.partialorder %v389_v10, 0.0  ;;  %v517_v18 = vmul.f32 0.1, %v389_v10  ;;  %v390_v19 = vadd.f32 %v1529_v9, %v319_v13 }
  0x2e   : > { %v1117_v20 = vpack.c.bf16 %v578_v17, %v578_v17  ;;  %v579_v21 = vsel %vm451_vm10, %v387_v7, %v515_v15  ;;  %v580_v22 = vsel %vm452_vm11, %v388_v8, %v516_v16  ;;  %v391_v23 = vadd.f32 %v1529_v9, %v320_v14 }
  0x2f   : > { %v1118_v25 = vpack.c.bf16 %v579_v21, %v579_v21  ;;  %v1119_v26 = vpack.c.bf16 %v580_v22, %v580_v22  ;;  %v581_v27 = vsel %vm453_vm12, %v389_v10, %v517_v18  ;;  %vm454_vm13 = vcmp.ge.f32.partialorder %v390_v19, 0.0  ;;  %v1313_v10 = vld [vmem:[%s1515_s28 + $0x60] sm:$0xff]  }
  0x30   : > { %899 = vst.msk [vmem:[%s1552_s8 + $0x20] sm:$0xf] %vm890_vm0, %v1117_v20  ;;  %v1120_v29 = vpack.c.bf16 %v581_v27, %v581_v27  ;;  %v518_v30 = vmul.f32 0.1, %v390_v19  ;;  %vm455_vm14 = vcmp.ge.f32.partialorder %v391_v23, 0.0  ;;  %v321_v32 = vmul.f32 %v1204_v6, %v1520_v0 }
  0x31   : > { %v519_v31 = vmul.f32 0.1, %v391_v23  ;;  %900 = vst.msk [vmem:[%s1552_s8 + $0x24] sm:$0xf] %vm890_vm0, %v1118_v25  ;;  %901 = vst.msk [vmem:[%s1552_s8 + $0x28] sm:$0xf] %vm890_vm0, %v1119_v26  ;;  %v322_v33 = vmul.f32 %v1205_v11, %v1520_v0  ;;  %v1208_v34 = vunpack.c.l.bf16 %v1309_v24  ;;  %v1209_v35 = vunpack.c.h.bf16 %v1309_v24 }
  0x32   : > { %902 = vst.msk [vmem:[%s1552_s8 + $0x2c] sm:$0xf] %vm890_vm0, %v1120_v29  ;;  %v582_v36 = vsel %vm454_vm13, %v390_v19, %v518_v30  ;;  %v1212_v38 = vunpack.c.l.bf16 %v1310_v28  ;;  %v1213_v39 = vunpack.c.h.bf16 %v1310_v28  ;;  %v392_v42 = vadd.f32 %v1529_v9, %v321_v32  ;;  %v1314_v19 = vld [vmem:[%s1515_s28 + $0x68] sm:$0xff]  }
  0x33   : > { %v583_v37 = vsel %vm455_vm14, %v391_v23, %v519_v31  ;;  %v1121_v40 = vpack.c.bf16 %v582_v36, %v582_v36  ;;  %v393_v43 = vadd.f32 %v1529_v9, %v322_v33  ;;  %v323_v44 = vmul.f32 %v1208_v34, %v1520_v0 }
  0x34   : > { %v1122_v41 = vpack.c.bf16 %v583_v37, %v583_v37  ;;  %v324_v45 = vmul.f32 %v1209_v35, %v1520_v0  ;;  %v325_v46 = vmul.f32 %v1212_v38, %v1520_v0  ;;  %v326_v47 = vmul.f32 %v1213_v39, %v1520_v0 }
  0x35   : > { %903 = vst.msk [vmem:[%s1552_s8 + $0x30] sm:$0xf] %vm890_vm0, %v1121_v40  ;;  %vm456_vm15 = vcmp.ge.f32.partialorder %v392_v42, 0.0  ;;  %v520_v49 = vmul.f32 0.1, %v392_v42  ;;  %vm457_vm1 = vcmp.ge.f32.partialorder %v393_v43, 0.0  ;;  %v394_v51 = vadd.f32 %v1529_v9, %v323_v44 }
  0x36   : > { %904 = vst.msk [vmem:[%s1552_s8 + $0x34] sm:$0xf] %vm890_vm0, %v1122_v41  ;;  %v521_v50 = vmul.f32 0.1, %v393_v43  ;;  %v395_v52 = vadd.f32 %v1529_v9, %v324_v45  ;;  %v396_v53 = vadd.f32 %v1529_v9, %v325_v46  ;;  %v397_v54 = vadd.f32 %v1529_v9, %v326_v47  ;;  %v1315_v46 = vld [vmem:[%s1515_s28 + $0x70] sm:$0xff]   ;;  %v1316_v47 = vld [vmem:[%s1515_s28 + $0x78] sm:$0xff]  }
  0x37   : > { %v584_v55 = vsel %vm456_vm15, %v392_v42, %v520_v49  ;;  %v1216_v57 = vunpack.c.l.bf16 %v1311_v48  ;;  %v1217_v58 = vunpack.c.h.bf16 %v1311_v48  ;;  %vm458_vm2 = vcmp.ge.f32.partialorder %v394_v51, 0.0 }
  0x38   : > { %v585_v56 = vsel %vm457_vm1, %v393_v43, %v521_v50  ;;  %v1123_v59 = vpack.c.bf16 %v584_v55, %v584_v55  ;;  %v522_v61 = vmul.f32 0.1, %v394_v51  ;;  %vm459_vm3 = vcmp.ge.f32.partialorder %v395_v52, 0.0 }
  0x39   : > { %v1124_v60 = vpack.c.bf16 %v585_v56, %v585_v56  ;;  %v523_v62 = vmul.f32 0.1, %v395_v52  ;;  %vm460_vm4 = vcmp.ge.f32.partialorder %v396_v53, 0.0  ;;  %v524_v63 = vmul.f32 0.1, %v396_v53 }
  0x3a   : > { %905 = vst.msk [vmem:[%s1552_s8 + $0x38] sm:$0xf] %vm890_vm0, %v1123_v59  ;;  %v586_v1 = vsel %vm458_vm2, %v394_v51, %v522_v61  ;;  %vm461_vm5 = vcmp.ge.f32.partialorder %v397_v54, 0.0  ;;  %v525_v2 = vmul.f32 0.1, %v397_v54  ;;  %v327_v3 = vmul.f32 %v1216_v57, %v1520_v0 }
  0x3b   : > { %906 = vst.msk [vmem:[%s1552_s8 + $0x3c] sm:$0xf] %vm890_vm0, %v1124_v60  ;;  %v1125_v5 = vpack.c.bf16 %v586_v1, %v586_v1  ;;  %v587_v6 = vsel %vm459_vm3, %v395_v52, %v523_v62  ;;  %v588_v7 = vsel %vm460_vm4, %v396_v53, %v524_v63  ;;  %v328_v8 = vmul.f32 %v1217_v58, %v1520_v0  ;;  %v1317_v52 = vld [vmem:[%s1515_s28 + $0x80] sm:$0xff]  }
  0x3c   : > { %v1126_v11 = vpack.c.bf16 %v587_v6, %v587_v6  ;;  %v1127_v12 = vpack.c.bf16 %v588_v7, %v588_v7  ;;  %v589_v13 = vsel %vm461_vm5, %v397_v54, %v525_v2  ;;  %v398_v14 = vadd.f32 %v1529_v9, %v327_v3 }
  0x3d   : > { %907 = vst.msk [vmem:[%s1552_s8 + $0x40] sm:$0xf] %vm890_vm0, %v1125_v5  ;;  %v1128_v15 = vpack.c.bf16 %v589_v13, %v589_v13  ;;  %v399_v16 = vadd.f32 %v1529_v9, %v328_v8  ;;  %v1220_v17 = vunpack.c.l.bf16 %v1312_v4  ;;  %v1221_v18 = vunpack.c.h.bf16 %v1312_v4 }
  0x3e   : > { %908 = vst.msk [vmem:[%s1552_s8 + $0x44] sm:$0xf] %vm890_vm0, %v1126_v11  ;;  %909 = vst.msk [vmem:[%s1552_s8 + $0x48] sm:$0xf] %vm890_vm0, %v1127_v12  ;;  %vm462_vm6 = vcmp.ge.f32.partialorder %v398_v14, 0.0  ;;  %v1224_v21 = vunpack.c.l.bf16 %v1313_v10  ;;  %v1225_v22 = vunpack.c.h.bf16 %v1313_v10  ;;  %v1228_v29 = vunpack.c.l.bf16 %v1314_v19 }
  0x3f   : > { %v526_v20 = vmul.f32 0.1, %v398_v14  ;;  %910 = vst.msk [vmem:[%s1552_s8 + $0x4c] sm:$0xf] %vm890_vm0, %v1128_v15  ;;  %vm463_vm7 = vcmp.ge.f32.partialorder %v399_v16, 0.0  ;;  %v329_v24 = vmul.f32 %v1220_v17, %v1520_v0  ;;  %v330_v25 = vmul.f32 %v1221_v18, %v1520_v0 }
  0x40   : > { %v527_v23 = vmul.f32 0.1, %v399_v16  ;;  %v331_v27 = vmul.f32 %v1224_v21, %v1520_v0  ;;  %v332_v28 = vmul.f32 %v1225_v22, %v1520_v0  ;;  %v333_v37 = vmul.f32 %v1228_v29, %v1520_v0  ;;  %v1319_v29 = vld [vmem:[%s1515_s28 + $0x90] sm:$0xff]  }
  0x41   : > { %v590_v26 = vsel %vm462_vm6, %v398_v14, %v526_v20  ;;  %v400_v32 = vadd.f32 %v1529_v9, %v329_v24  ;;  %v401_v33 = vadd.f32 %v1529_v9, %v330_v25  ;;  %v1229_v45 = vunpack.c.h.bf16 %v1314_v19  ;;  %v1318_v24 = vld [vmem:[%s1515_s28 + $0x88] sm:$0xff]  }
  0x42   : > { %v1129_v30 = vpack.c.bf16 %v590_v26, %v590_v26  ;;  %v591_v31 = vsel %vm463_vm7, %v399_v16, %v527_v23  ;;  %v402_v35 = vadd.f32 %v1529_v9, %v331_v27  ;;  %v403_v36 = vadd.f32 %v1529_v9, %v332_v28 }
  0x43   : > { %v1130_v34 = vpack.c.bf16 %v591_v31, %v591_v31  ;;  %vm464_vm8 = vcmp.ge.f32.partialorder %v400_v32, 0.0  ;;  %v528_v38 = vmul.f32 0.1, %v400_v32  ;;  %vm465_vm9 = vcmp.ge.f32.partialorder %v401_v33, 0.0 }
  0x44   : > { %911 = vst.msk [vmem:[%s1552_s8 + $0x50] sm:$0xf] %vm890_vm0, %v1129_v30  ;;  %v529_v39 = vmul.f32 0.1, %v401_v33  ;;  %vm466_vm10 = vcmp.ge.f32.partialorder %v402_v35, 0.0  ;;  %vm467_vm11 = vcmp.ge.f32.partialorder %v403_v36, 0.0  ;;  %v404_v44 = vadd.f32 %v1529_v9, %v333_v37 }
  0x45   : > { %912 = vst.msk [vmem:[%s1552_s8 + $0x54] sm:$0xf] %vm890_vm0, %v1130_v34  ;;  %v530_v40 = vmul.f32 0.1, %v402_v35  ;;  %v531_v41 = vmul.f32 0.1, %v403_v36  ;;  %v592_v42 = vsel %vm464_vm8, %v400_v32, %v528_v38  ;;  %v334_v56 = vmul.f32 %v1229_v45, %v1520_v0 }
  0x46   : > { %v593_v43 = vsel %vm465_vm9, %v401_v33, %v529_v39  ;;  %v1131_v48 = vpack.c.bf16 %v592_v42, %v592_v42  ;;  %vm468_vm12 = vcmp.ge.f32.partialorder %v404_v44, 0.0  ;;  %v532_v55 = vmul.f32 0.1, %v404_v44  ;;  %v1320_v33 = vld [vmem:[%s1515_s28 + $0x98] sm:$0xff]   ;;  %v1321_v42 = vld [vmem:[%s1515_s28 + $0xa0] sm:$0xff]  }
  0x47   : > { %v1132_v49 = vpack.c.bf16 %v593_v43, %v593_v43  ;;  %v594_v50 = vsel %vm466_vm10, %v402_v35, %v530_v40  ;;  %v595_v51 = vsel %vm467_vm11, %v403_v36, %v531_v41  ;;  %v1232_v57 = vunpack.c.l.bf16 %v1315_v46 }
  0x48   : > { %v1133_v53 = vpack.c.bf16 %v594_v50, %v594_v50  ;;  %v1134_v54 = vpack.c.bf16 %v595_v51, %v595_v51  ;;  %913 = vst.msk [vmem:[%s1552_s8 + $0x58] sm:$0xf] %vm890_vm0, %v1131_v48  ;;  %v1233_v58 = vunpack.c.h.bf16 %v1315_v46  ;;  %v1236_v59 = vunpack.c.l.bf16 %v1316_v47 }
  0x49   : > { %914 = vst.msk [vmem:[%s1552_s8 + $0x5c] sm:$0xf] %vm890_vm0, %v1132_v49  ;;  %v596_v60 = vsel %vm468_vm12, %v404_v44, %v532_v55  ;;  %v1237_v61 = vunpack.c.h.bf16 %v1316_v47  ;;  %v1240_v62 = vunpack.c.l.bf16 %v1317_v52  ;;  %v1241_v63 = vunpack.c.h.bf16 %v1317_v52 }
  0x4a   : > { %915 = vst.msk [vmem:[%s1552_s8 + $0x60] sm:$0xf] %vm890_vm0, %v1133_v53  ;;  %916 = vst.msk [vmem:[%s1552_s8 + $0x64] sm:$0xf] %vm890_vm0, %v1134_v54  ;;  %v1135_v1 = vpack.c.bf16 %v596_v60, %v596_v60  ;;  %v405_v2 = vadd.f32 %v1529_v9, %v334_v56  ;;  %v335_v3 = vmul.f32 %v1232_v57, %v1520_v0  ;;  %v1244_v37 = vunpack.c.l.bf16 %v1318_v24 }
  0x4b   : > { %v336_v4 = vmul.f32 %v1233_v58, %v1520_v0  ;;  %v337_v5 = vmul.f32 %v1236_v59, %v1520_v0  ;;  %v338_v6 = vmul.f32 %v1237_v61, %v1520_v0  ;;  %v339_v7 = vmul.f32 %v1240_v62, %v1520_v0 }
  0x4c   : > { %v340_v8 = vmul.f32 %v1241_v63, %v1520_v0  ;;  %917 = vst.msk [vmem:[%s1552_s8 + $0x68] sm:$0xf] %vm890_vm0, %v1135_v1  ;;  %vm469_vm13 = vcmp.ge.f32.partialorder %v405_v2, 0.0  ;;  %v533_v10 = vmul.f32 0.1, %v405_v2  ;;  %v406_v11 = vadd.f32 %v1529_v9, %v335_v3 }
  0x4d   : > { %v407_v12 = vadd.f32 %v1529_v9, %v336_v4  ;;  %v408_v13 = vadd.f32 %v1529_v9, %v337_v5  ;;  %v409_v14 = vadd.f32 %v1529_v9, %v338_v6  ;;  %v410_v15 = vadd.f32 %v1529_v9, %v339_v7  ;;  %v1322_v7 = vld [vmem:[%s1515_s28 + $0xa8] sm:$0xff]  }
  0x4e   : > { %v411_v16 = vadd.f32 %v1529_v9, %v340_v8  ;;  %v597_v17 = vsel %vm469_vm13, %v405_v2, %v533_v10  ;;  %vm470_vm14 = vcmp.ge.f32.partialorder %v406_v11, 0.0  ;;  %v534_v18 = vmul.f32 0.1, %v406_v11 }
  0x4f   : > { %vm471_vm15 = vcmp.ge.f32.partialorder %v407_v12, 0.0  ;;  %v1136_v19 = vpack.c.bf16 %v597_v17, %v597_v17  ;;  %v535_v20 = vmul.f32 0.1, %v407_v12  ;;  %vm472_vm1 = vcmp.ge.f32.partialorder %v408_v13, 0.0 }
  0x50   : > { %v536_v21 = vmul.f32 0.1, %v408_v13  ;;  %v598_v22 = vsel %vm470_vm14, %v406_v11, %v534_v18  ;;  %vm473_vm2 = vcmp.ge.f32.partialorder %v409_v14, 0.0  ;;  %v537_v23 = vmul.f32 0.1, %v409_v14 }
  0x51   : > { %vm474_vm3 = vcmp.ge.f32.partialorder %v410_v15, 0.0  ;;  %918 = vst.msk [vmem:[%s1552_s8 + $0x6c] sm:$0xf] %vm890_vm0, %v1136_v19  ;;  %v1137_v25 = vpack.c.bf16 %v598_v22, %v598_v22  ;;  %v599_v26 = vsel %vm471_vm15, %v407_v12, %v535_v20  ;;  %v538_v28 = vmul.f32 0.1, %v410_v15  ;;  %v1323_v12 = vld [vmem:[%s1515_s28 + $0xb0] sm:$0xff]  }
  0x52   : > { %v600_v27 = vsel %vm472_vm1, %v408_v13, %v536_v21  ;;  %v1138_v30 = vpack.c.bf16 %v599_v26, %v599_v26  ;;  %v601_v32 = vsel %vm473_vm2, %v409_v14, %v537_v23  ;;  %vm475_vm4 = vcmp.ge.f32.partialorder %v411_v16, 0.0 }
  0x53   : > { %v1139_v31 = vpack.c.bf16 %v600_v27, %v600_v27  ;;  %919 = vst.msk [vmem:[%s1552_s8 + $0x70] sm:$0xf] %vm890_vm0, %v1137_v25  ;;  %v1140_v34 = vpack.c.bf16 %v601_v32, %v601_v32  ;;  %v602_v35 = vsel %vm474_vm3, %v410_v15, %v538_v28  ;;  %v539_v36 = vmul.f32 0.1, %v411_v16 }
  0x54   : > { %920 = vst.msk [vmem:[%s1552_s8 + $0x74] sm:$0xf] %vm890_vm0, %v1138_v30  ;;  %v1141_v38 = vpack.c.bf16 %v602_v35, %v602_v35  ;;  %v1245_v39 = vunpack.c.h.bf16 %v1318_v24  ;;  %v1248_v40 = vunpack.c.l.bf16 %v1319_v29  ;;  %v1249_v41 = vunpack.c.h.bf16 %v1319_v29  ;;  %v1324_v29 = vld [vmem:[%s1515_s28 + $0xb8] sm:$0xff]  }
  0x55   : > { %921 = vst.msk [vmem:[%s1552_s8 + $0x78] sm:$0xf] %vm890_vm0, %v1139_v31  ;;  %922 = vst.msk [vmem:[%s1552_s8 + $0x7c] sm:$0xf] %vm890_vm0, %v1140_v34  ;;  %v603_v43 = vsel %vm475_vm4, %v411_v16, %v539_v36  ;;  %v341_v44 = vmul.f32 %v1244_v37, %v1520_v0  ;;  %v1252_v45 = vunpack.c.l.bf16 %v1320_v33  ;;  %v1253_v46 = vunpack.c.h.bf16 %v1320_v33 }
  0x56   : > { %923 = vst.msk [vmem:[%s1552_s8 + $0x80] sm:$0xf] %vm890_vm0, %v1141_v38  ;;  %v1142_v47 = vpack.c.bf16 %v603_v43, %v603_v43  ;;  %v342_v48 = vmul.f32 %v1245_v39, %v1520_v0  ;;  %v343_v49 = vmul.f32 %v1248_v40, %v1520_v0  ;;  %v344_v50 = vmul.f32 %v1249_v41, %v1520_v0 }
  0x57   : > { %v412_v51 = vadd.f32 %v1529_v9, %v341_v44  ;;  %v345_v52 = vmul.f32 %v1252_v45, %v1520_v0  ;;  %v346_v53 = vmul.f32 %v1253_v46, %v1520_v0  ;;  %v1256_v54 = vunpack.c.l.bf16 %v1321_v42  ;;  %v1325_v45 = vld [vmem:[%s1515_s28 + $0xc0] sm:$0xff]  }
  0x58   : > { %924 = vst.msk [vmem:[%s1552_s8 + $0x84] sm:$0xf] %vm890_vm0, %v1142_v47  ;;  %v413_v55 = vadd.f32 %v1529_v9, %v342_v48  ;;  %v414_v56 = vadd.f32 %v1529_v9, %v343_v49  ;;  %v415_v57 = vadd.f32 %v1529_v9, %v344_v50  ;;  %v1257_v58 = vunpack.c.h.bf16 %v1321_v42 }
  0x59   : > { %vm476_vm5 = vcmp.ge.f32.partialorder %v412_v51, 0.0  ;;  %v540_v59 = vmul.f32 0.1, %v412_v51  ;;  %v416_v60 = vadd.f32 %v1529_v9, %v345_v52  ;;  %v417_v61 = vadd.f32 %v1529_v9, %v346_v53  ;;  %v1326_v53 = vld [vmem:[%s1515_s28 + $0xc8] sm:$0xff]  }
  0x5a   : > { %vm477_vm6 = vcmp.ge.f32.partialorder %v413_v55, 0.0  ;;  %v541_v62 = vmul.f32 0.1, %v413_v55  ;;  %vm478_vm7 = vcmp.ge.f32.partialorder %v414_v56, 0.0  ;;  %v542_v63 = vmul.f32 0.1, %v414_v56 }
  0x5b   : > { %v604_v1 = vsel %vm476_vm5, %v412_v51, %v540_v59  ;;  %vm479_vm8 = vcmp.ge.f32.partialorder %v415_v57, 0.0  ;;  %v543_v2 = vmul.f32 0.1, %v415_v57  ;;  %vm480_vm9 = vcmp.ge.f32.partialorder %v416_v60, 0.0 }
  0x5c   : > { %v1143_v3 = vpack.c.bf16 %v604_v1, %v604_v1  ;;  %v605_v4 = vsel %vm477_vm6, %v413_v55, %v541_v62  ;;  %v606_v5 = vsel %vm478_vm7, %v414_v56, %v542_v63  ;;  %v544_v6 = vmul.f32 0.1, %v416_v60 }
  0x5d   : > { %v1144_v8 = vpack.c.bf16 %v605_v4, %v605_v4  ;;  %v1145_v10 = vpack.c.bf16 %v606_v5, %v606_v5  ;;  %v607_v11 = vsel %vm479_vm8, %v415_v57, %v543_v2  ;;  %vm481_vm10 = vcmp.ge.f32.partialorder %v417_v61, 0.0 }
  0x5e   : > { %925 = vst.msk [vmem:[%s1552_s8 + $0x88] sm:$0xf] %vm890_vm0, %v1143_v3  ;;  %v1146_v13 = vpack.c.bf16 %v607_v11, %v607_v11  ;;  %v608_v14 = vsel %vm480_vm9, %v416_v60, %v544_v6  ;;  %v545_v15 = vmul.f32 0.1, %v417_v61  ;;  %v347_v16 = vmul.f32 %v1256_v54, %v1520_v0 }
  0x5f   : > { %926 = vst.msk [vmem:[%s1552_s8 + $0x8c] sm:$0xf] %vm890_vm0, %v1144_v8  ;;  %927 = vst.msk [vmem:[%s1552_s8 + $0x90] sm:$0xf] %vm890_vm0, %v1145_v10  ;;  %v1147_v17 = vpack.c.bf16 %v608_v14, %v608_v14  ;;  %v348_v18 = vmul.f32 %v1257_v58, %v1520_v0  ;;  %v1260_v19 = vunpack.c.l.bf16 %v1322_v7  ;;  %v1261_v20 = vunpack.c.h.bf16 %v1322_v7  ;;  %v1737_v58 = vld [vmem:[%s1515_s28 + $0xd0] sm:$0xff]  }
  0x60   : > { %928 = vst.msk [vmem:[%s1552_s8 + $0x94] sm:$0xf] %vm890_vm0, %v1146_v13  ;;  %v609_v21 = vsel %vm481_vm10, %v417_v61, %v545_v15  ;;  %v418_v22 = vadd.f32 %v1529_v9, %v347_v16  ;;  %v1264_v23 = vunpack.c.l.bf16 %v1323_v12  ;;  %v1265_v24 = vunpack.c.h.bf16 %v1323_v12 }
  0x61   : > { %929 = vst.msk [vmem:[%s1552_s8 + $0x98] sm:$0xf] %vm890_vm0, %v1147_v17  ;;  %v1148_v25 = vpack.c.bf16 %v609_v21, %v609_v21  ;;  %v419_v26 = vadd.f32 %v1529_v9, %v348_v18  ;;  %v349_v27 = vmul.f32 %v1260_v19, %v1520_v0  ;;  %v350_v28 = vmul.f32 %v1261_v20, %v1520_v0 }
  0x62   : > { %vm482_vm11 = vcmp.ge.f32.partialorder %v418_v22, 0.0  ;;  %v546_v30 = vmul.f32 0.1, %v418_v22  ;;  %v351_v31 = vmul.f32 %v1264_v23, %v1520_v0  ;;  %v352_v32 = vmul.f32 %v1265_v24, %v1520_v0 }
  0x63   : > { %930 = vst.msk [vmem:[%s1552_s8 + $0x9c] sm:$0xf] %vm890_vm0, %v1148_v25  ;;  %vm483_vm12 = vcmp.ge.f32.partialorder %v419_v26, 0.0  ;;  %v547_v33 = vmul.f32 0.1, %v419_v26  ;;  %v420_v34 = vadd.f32 %v1529_v9, %v349_v27  ;;  %v421_v35 = vadd.f32 %v1529_v9, %v350_v28  ;;  %v1328_v25 = vld [vmem:[%s1515_s28 + $0xd8] sm:$0xff]  }
  0x64   : > { %v610_v36 = vsel %vm482_vm11, %v418_v22, %v546_v30  ;;  %v422_v37 = vadd.f32 %v1529_v9, %v351_v31  ;;  %v423_v38 = vadd.f32 %v1529_v9, %v352_v32  ;;  %v1268_v39 = vunpack.c.l.bf16 %v1324_v29 }
  0x65   : > { %v1149_v40 = vpack.c.bf16 %v610_v36, %v610_v36  ;;  %v611_v41 = vsel %vm483_vm12, %v419_v26, %v547_v33  ;;  %vm484_vm13 = vcmp.ge.f32.partialorder %v420_v34, 0.0  ;;  %v548_v42 = vmul.f32 0.1, %v420_v34  ;;  %v1330_v36 = vld [vmem:[%s1515_s28 + $0xe8] sm:$0xff]  }
  0x66   : > { %v1150_v43 = vpack.c.bf16 %v611_v41, %v611_v41  ;;  %vm485_vm14 = vcmp.ge.f32.partialorder %v421_v35, 0.0  ;;  %v549_v44 = vmul.f32 0.1, %v421_v35  ;;  %vm486_vm15 = vcmp.ge.f32.partialorder %v422_v37, 0.0  ;;  %v1331_v41 = vld [vmem:[%s1515_s28 + $0xf0] sm:$0xff]  }
  0x67   : > { %931 = vst.msk [vmem:[%s1552_s8 + $0xa0] sm:$0xf] %vm890_vm0, %v1149_v40  ;;  %v612_v46 = vsel %vm484_vm13, %v420_v34, %v548_v42  ;;  %v550_v47 = vmul.f32 0.1, %v422_v37  ;;  %vm487_vm1 = vcmp.ge.f32.partialorder %v423_v38, 0.0  ;;  %v353_v51 = vmul.f32 %v1268_v39, %v1520_v0 }
  0x68   : > { %v551_v48 = vmul.f32 0.1, %v423_v38  ;;  %932 = vst.msk [vmem:[%s1552_s8 + $0xa4] sm:$0xf] %vm890_vm0, %v1150_v43  ;;  %v1151_v49 = vpack.c.bf16 %v612_v46, %v612_v46  ;;  %v613_v50 = vsel %vm485_vm14, %v421_v35, %v549_v44  ;;  %v1269_v52 = vunpack.c.h.bf16 %v1324_v29  ;;  %v1329_v35 = vld [vmem:[%s1515_s28 + $0xe0] sm:$0xff]  }
  0x69   : > { %v1152_v54 = vpack.c.bf16 %v613_v50, %v613_v50  ;;  %v614_v55 = vsel %vm486_vm15, %v422_v37, %v550_v47  ;;  %v1272_v57 = vunpack.c.l.bf16 %v1325_v45  ;;  %v424_v61 = vadd.f32 %v1529_v9, %v353_v51 }
  0x6a   : > { %v615_v56 = vsel %vm487_vm1, %v423_v38, %v551_v48  ;;  %933 = vst.msk [vmem:[%s1552_s8 + $0xa8] sm:$0xf] %vm890_vm0, %v1151_v49  ;;  %v1153_v59 = vpack.c.bf16 %v614_v55, %v614_v55  ;;  %v354_v62 = vmul.f32 %v1269_v52, %v1520_v0  ;;  %v1273_v1 = vunpack.c.h.bf16 %v1325_v45 }
  0x6b   : > { %v1154_v60 = vpack.c.bf16 %v615_v56, %v615_v56  ;;  %934 = vst.msk [vmem:[%s1552_s8 + $0xac] sm:$0xf] %vm890_vm0, %v1152_v54  ;;  %v355_v63 = vmul.f32 %v1272_v57, %v1520_v0  ;;  %v1276_v2 = vunpack.c.l.bf16 %v1326_v53  ;;  %v1277_v3 = vunpack.c.h.bf16 %v1326_v53 }
  0x6c   : > { %935 = vst.msk [vmem:[%s1552_s8 + $0xb0] sm:$0xf] %vm890_vm0, %v1153_v59  ;;  %vm488_vm2 = vcmp.ge.f32.partialorder %v424_v61, 0.0  ;;  %v552_v4 = vmul.f32 0.1, %v424_v61  ;;  %v425_v5 = vadd.f32 %v1529_v9, %v354_v62  ;;  %v1280_v6 = vunpack.c.l.bf16 %v1737_v58 }
  0x6d   : > { %936 = vst.msk [vmem:[%s1552_s8 + $0xb4] sm:$0xf] %vm890_vm0, %v1154_v60  ;;  %v426_v7 = vadd.f32 %v1529_v9, %v355_v63  ;;  %v356_v8 = vmul.f32 %v1273_v1, %v1520_v0  ;;  %v357_v10 = vmul.f32 %v1276_v2, %v1520_v0  ;;  %v358_v11 = vmul.f32 %v1277_v3, %v1520_v0 }
  0x6e   : > { %v616_v12 = vsel %vm488_vm2, %v424_v61, %v552_v4  ;;  %vm489_vm3 = vcmp.ge.f32.partialorder %v425_v5, 0.0  ;;  %v553_v13 = vmul.f32 0.1, %v425_v5  ;;  %v359_v14 = vmul.f32 %v1280_v6, %v1520_v0 }
  0x6f   : > { %v1155_v15 = vpack.c.bf16 %v616_v12, %v616_v12  ;;  %vm490_vm4 = vcmp.ge.f32.partialorder %v426_v7, 0.0  ;;  %v554_v16 = vmul.f32 0.1, %v426_v7  ;;  %v427_v17 = vadd.f32 %v1529_v9, %v356_v8 }
  0x70   : > { %v617_v18 = vsel %vm489_vm3, %v425_v5, %v553_v13  ;;  %v428_v19 = vadd.f32 %v1529_v9, %v357_v10  ;;  %v429_v20 = vadd.f32 %v1529_v9, %v358_v11  ;;  %v430_v21 = vadd.f32 %v1529_v9, %v359_v14 }
  0x71   : > { %937 = vst.msk [vmem:[%s1552_s8 + $0xb8] sm:$0xf] %vm890_vm0, %v1155_v15  ;;  %v1156_v22 = vpack.c.bf16 %v617_v18, %v617_v18  ;;  %v618_v23 = vsel %vm490_vm4, %v426_v7, %v554_v16  ;;  %vm491_vm5 = vcmp.ge.f32.partialorder %v427_v17, 0.0  ;;  %v555_v24 = vmul.f32 0.1, %v427_v17  ;;  %v1332_v7 = vld [vmem:[%s1515_s28 + $0xf8] sm:$0xff]  }
  0x72   : > { %v1157_v26 = vpack.c.bf16 %v618_v23, %v618_v23  ;;  %vm492_vm6 = vcmp.ge.f32.partialorder %v428_v19, 0.0  ;;  %v556_v27 = vmul.f32 0.1, %v428_v19  ;;  %vm493_vm7 = vcmp.ge.f32.partialorder %v429_v20, 0.0  ;;  %s1440_s28 = smov [#allocation2]  }
  0x73   : > { %938 = vst.msk [vmem:[%s1552_s8 + $0xbc] sm:$0xf] %vm890_vm0, %v1156_v22  ;;  %v619_v28 = vsel %vm491_vm5, %v427_v17, %v555_v24  ;;  %v557_v29 = vmul.f32 0.1, %v429_v20  ;;  %vm494_vm8 = vcmp.ge.f32.partialorder %v430_v21, 0.0  ;;  %v1281_v33 = vunpack.c.h.bf16 %v1737_v58  ;;  %s1380_s29 = sshll.u32 %s1440_s28, 4  ;;  %s1381_s29 = int_to_ptr.vmem [resolvable:$false] %s1380_s29 }
  0x74   : > { %v558_v30 = vmul.f32 0.1, %v430_v21  ;;  %939 = vst.msk [vmem:[%s1552_s8 + $0xc0] sm:$0xf] %vm890_vm0, %v1157_v26  ;;  %v1158_v31 = vpack.c.bf16 %v619_v28, %v619_v28  ;;  %v620_v32 = vsel %vm492_vm6, %v428_v19, %v556_v27  ;;  %v1284_v34 = vunpack.c.l.bf16 %v1328_v25  ;;  %s1382_s30 = scalar_lea.vmem %s1381_s29, 8192  ;;  %p1383_p0 = scmp.lt.s32.totalorder %s1828_s20, %s1381_s29 }
  0x75   : > { %v1159_v37 = vpack.c.bf16 %v620_v32, %v620_v32  ;;  %v621_v38 = vsel %vm493_vm7, %v429_v20, %v557_v29  ;;  %v1285_v40 = vunpack.c.h.bf16 %v1328_v25  ;;  %v360_v44 = vmul.f32 %v1281_v33, %v1520_v0  ;;  %p1384_p1 = scmp.lt.s32.totalorder %s1382_s30, %s1376_s27 }
  0x76   : > { %v622_v39 = vsel %vm494_vm8, %v430_v21, %v558_v30  ;;  %940 = vst.msk [vmem:[%s1552_s8 + $0xc4] sm:$0xf] %vm890_vm0, %v1158_v31  ;;  %v1160_v42 = vpack.c.bf16 %v621_v38, %v621_v38  ;;  %v361_v45 = vmul.f32 %v1284_v34, %v1520_v0  ;;  %v1288_v47 = vunpack.c.l.bf16 %v1329_v35 }
  0x77   : > { %v1161_v43 = vpack.c.bf16 %v622_v39, %v622_v39  ;;  %941 = vst.msk [vmem:[%s1552_s8 + $0xc8] sm:$0xf] %vm890_vm0, %v1159_v37  ;;  %v362_v46 = vmul.f32 %v1285_v40, %v1520_v0  ;;  %v1289_v48 = vunpack.c.h.bf16 %v1329_v35  ;;  %v1292_v49 = vunpack.c.l.bf16 %v1330_v36  ;;  %p1385_p2 = por %p1384_p1, %p1383_p0 }
  0x78   : > { %942 = vst.msk [vmem:[%s1552_s8 + $0xcc] sm:$0xf] %vm890_vm0, %v1160_v42  ;;  %v431_v50 = vadd.f32 %v1529_v9, %v360_v44  ;;  %v432_v51 = vadd.f32 %v1529_v9, %v361_v45  ;;  %v1293_v52 = vunpack.c.h.bf16 %v1330_v36  ;;  %v1296_v53 = vunpack.c.l.bf16 %v1331_v41 }
  0x79   : > { %943 = vst.msk [vmem:[%s1552_s8 + $0xd0] sm:$0xf] %vm890_vm0, %v1161_v43  ;;  %v433_v54 = vadd.f32 %v1529_v9, %v362_v46  ;;  %v363_v55 = vmul.f32 %v1288_v47, %v1520_v0  ;;  %v364_v56 = vmul.f32 %v1289_v48, %v1520_v0  ;;  %v365_v57 = vmul.f32 %v1292_v49, %v1520_v0  ;;  %p1386_p3 = pnand %p1385_p2, %p1379_p13 }
  0x7a   : > { %vm495_vm9 = vcmp.ge.f32.partialorder %v431_v50, 0.0  ;;  %v559_v58 = vmul.f32 0.1, %v431_v50  ;;  %vm496_vm10 = vcmp.ge.f32.partialorder %v432_v51, 0.0  ;;  %v560_v59 = vmul.f32 0.1, %v432_v51 }
  0x7b   : > { %vm497_vm11 = vcmp.ge.f32.partialorder %v433_v54, 0.0  ;;  %v561_v60 = vmul.f32 0.1, %v433_v54  ;;  %v434_v61 = vadd.f32 %v1529_v9, %v363_v55  ;;  %v435_v62 = vadd.f32 %v1529_v9, %v364_v56 }
  0x7c   : > { %v623_v63 = vsel %vm495_vm9, %v431_v50, %v559_v58  ;;  %v624_v1 = vsel %vm496_vm10, %v432_v51, %v560_v59  ;;  %v436_v2 = vadd.f32 %v1529_v9, %v365_v57  ;;  %v366_v3 = vmul.f32 %v1293_v52, %v1520_v0 }
  0x7d   : > { %v1162_v4 = vpack.c.bf16 %v623_v63, %v623_v63  ;;  %v1163_v5 = vpack.c.bf16 %v624_v1, %v624_v1  ;;  %v625_v6 = vsel %vm497_vm11, %v433_v54, %v561_v60  ;;  %vm498_vm12 = vcmp.ge.f32.partialorder %v434_v61, 0.0 }
  0x7e   : > { %v1164_v8 = vpack.c.bf16 %v625_v6, %v625_v6  ;;  %v562_v10 = vmul.f32 0.1, %v434_v61  ;;  %vm499_vm13 = vcmp.ge.f32.partialorder %v435_v62, 0.0  ;;  %v563_v11 = vmul.f32 0.1, %v435_v62 }
  0x7f   : > { %944 = vst.msk [vmem:[%s1552_s8 + $0xd4] sm:$0xf] %vm890_vm0, %v1162_v4  ;;  %945 = vst.msk [vmem:[%s1552_s8 + $0xd8] sm:$0xf] %vm890_vm0, %v1163_v5  ;;  %vm500_vm14 = vcmp.ge.f32.partialorder %v436_v2, 0.0  ;;  %v437_v13 = vadd.f32 %v1529_v9, %v366_v3  ;;  %v367_v14 = vmul.f32 %v1296_v53, %v1520_v0  ;;  %v1297_v17 = vunpack.c.h.bf16 %v1331_v41 }
  0x80   : > { %v564_v12 = vmul.f32 0.1, %v436_v2  ;;  %946 = vst.msk [vmem:[%s1552_s8 + $0xdc] sm:$0xf] %vm890_vm0, %v1164_v8  ;;  %v626_v15 = vsel %vm498_vm12, %v434_v61, %v562_v10  ;;  %v627_v16 = vsel %vm499_vm13, %v435_v62, %v563_v11  ;;  %v1300_v18 = vunpack.c.l.bf16 %v1332_v7  ;;  %v1374_v0 = vld [vmem:[%s1878_s1] ss:$0 sm:$0xff] }
  0x81   : > { %v1165_v19 = vpack.c.bf16 %v626_v15, %v626_v15  ;;  %v1166_v20 = vpack.c.bf16 %v627_v16, %v627_v16  ;;  %vm501_vm15 = vcmp.ge.f32.partialorder %v437_v13, 0.0  ;;  %v565_v23 = vmul.f32 0.1, %v437_v13 }
  0x82   : > { %v628_v21 = vsel %vm500_vm14, %v436_v2, %v564_v12  ;;  %v438_v24 = vadd.f32 %v1529_v9, %v367_v14  ;;  %v368_v25 = vmul.f32 %v1374_v0, %v1297_v17  ;;  %v369_v26 = vmul.f32 %v1374_v0, %v1300_v18  ;;  %v1375_v9 = vld [vmem:[%s1879_s2] ss:$0 sm:$0xff] }
  0x83   : > { %v1167_v22 = vpack.c.bf16 %v628_v21, %v628_v21  ;;  %947 = vst.msk [vmem:[%s1552_s8 + $0xe0] sm:$0xf] %vm890_vm0, %v1165_v19  ;;  %948 = vst.msk [vmem:[%s1552_s8 + $0xe4] sm:$0xf] %vm890_vm0, %v1166_v20  ;;  %v1301_v27 = vunpack.c.h.bf16 %v1332_v7  ;;  %v629_v28 = vsel %vm501_vm15, %v437_v13, %v565_v23 }
  0x84   : > { %vm502_vm1 = vcmp.ge.f32.partialorder %v438_v24, 0.0  ;;  %v566_v29 = vmul.f32 0.1, %v438_v24  ;;  %v439_v30 = vadd.f32 %v1375_v9, %v368_v25  ;;  %v1168_v31 = vpack.c.bf16 %v629_v28, %v629_v28 }
  0x85   : > { %949 = vst.msk [vmem:[%s1552_s8 + $0xe8] sm:$0xf] %vm890_vm0, %v1167_v22  ;;  %v440_v32 = vadd.f32 %v1375_v9, %v369_v26  ;;  %v370_v33 = vmul.f32 %v1374_v0, %v1301_v27 }
  0x86   : > { %v630_v34 = vsel %vm502_vm1, %v438_v24, %v566_v29  ;;  %vm503_vm2 = vcmp.ge.f32.partialorder %v439_v30, 0.0  ;;  %v567_v35 = vmul.f32 0.1, %v439_v30  ;;  %950 = vst.msk [vmem:[%s1552_s8 + $0xec] sm:$0xf] %vm890_vm0, %v1168_v31 }
  0x87   : > { %v1169_v36 = vpack.c.bf16 %v630_v34, %v630_v34  ;;  %vm504_vm3 = vcmp.ge.f32.partialorder %v440_v32, 0.0  ;;  %v568_v37 = vmul.f32 0.1, %v440_v32  ;;  %v441_v38 = vadd.f32 %v1375_v9, %v370_v33 }
  0x88   : > { %v631_v39 = vsel %vm503_vm2, %v439_v30, %v567_v35 }
  0x89   : > { %951 = vst.msk [vmem:[%s1552_s8 + $0xf0] sm:$0xf] %vm890_vm0, %v1169_v36  ;;  %v1170_v40 = vpack.c.bf16 %v631_v39, %v631_v39  ;;  %v632_v41 = vsel %vm504_vm3, %v440_v32, %v568_v37  ;;  %vm505_vm4 = vcmp.ge.f32.partialorder %v441_v38, 0.0  ;;  %v569_v42 = vmul.f32 0.1, %v441_v38 }
  0x8a   : > { %v1171_v43 = vpack.c.bf16 %v632_v41, %v632_v41 }
  0x8b   : > { %952 = vst.msk [vmem:[%s1552_s8 + $0xf4] sm:$0xf] %vm890_vm0, %v1170_v40  ;;  %v633_v44 = vsel %vm505_vm4, %v441_v38, %v569_v42 }
  0x8c   : > { %953 = vst.msk [vmem:[%s1552_s8 + $0xf8] sm:$0xf] %vm890_vm0, %v1171_v43  ;;  %v1172_v45 = vpack.c.bf16 %v633_v44, %v633_v44 }
  0x8e   : > { %954 = vst.msk [vmem:[%s1552_s8 + $0xfc] sm:$0xf] %vm890_vm0, %v1172_v45 }
  0x8f   : > { %1389 = shalt.err (!%p1386_p3)
}
  0x90   : > { %s1390_s4 = scalar_lea.hbm %s1826_s26, 4096  ;;  %s1394_s7 = scalar_lea.hbm %s1880_s3, 16384 }
  0x91   : > { %p1391_p4 = scmp.ne.s32.totalorder %s1826_s26, %s1390_s4  ;;  %p1395_p9 = scmp.lt.u32.totalorder %s1826_s26, %s1880_s3 }
  0x92   : > { %p1396_p10 = scmp.lt.u32.totalorder %s1394_s7, %s1390_s4  ;;  %p1398_p12 = scmp.lt.u32.totalorder %s1390_s4, %s1826_s26 }
  0x93   : > { %p1392_p7 = pnand %p1391_p4, %p1501_p5 }
  0x94   : > { %p1397_p11 = por %p1396_p10, %p1395_p9 }
  0x95   : > { %p1393_p8 = pneg %p1392_p7 }
  0x96   : > { %p1399_p13 = por %p1398_p12, %p1397_p11 }
  0x98   : > { %p1400_p0 = pnand %p1399_p13, %p1393_p8 }
  0x9a   : > { %1403 = shalt.err (!%p1400_p0)
}
  0x9b   : > { %s1441_s10 = smov 64   ;;  %s1442_s11 = smov 4  }
  0x9c   : > { %1333 = dma.vmem_to_hbm [thread:$0]  (%p1501_p5), %s1828_s20, 4096, %s1826_s26, %s1836_s16, %s1441_s10, %s1441_s10, %s1442_s11  }
  0x9d PF: > { %p1339_p1 = scmp.ge.s32.totalorder %s1438_s15, 2  ;;  %s984_s17 = sand.u32 1, %s1426_s12  }
  0x9e   : > { %s985_s19 = scalar_lea.sflag [#allocation3], %s984_s17 }
  0x9f   : > { %p1336_p2 = pnand %p1339_p1, %p1505_p6 }
  0xa1   : > { %1421 = dma.done.wait (!%p1336_p2), %s985_s19, 4096  }
  0xa2   : > { %1423 = vsyncadd (!%p1336_p2), %s985_s19, 4294963200  ;;  %p13_p3 = scmp.ge.s32.totalorder %s1488_s18, 6   ;;  %s1883_s12 = smov %s1430_s13 }
  0xa3   : > { %s1884_s13 = smov %s1434_s14  ;;  %s1885_s14 = smov %s1499_s21 }
  0xa4   : > { %s1886_s15 = smov %s1488_s18  ;;  %15 = sbr.rel (!%p13_p3) target bundleno = 3 (0x3), region = 67 }
  0xab   :  { %990 = vsyncpa [#allocation3], 1 }
  0xac   :  { %992 = vsyncpa [#allocation3 + $0x1], 1 }

</bundles_post_ra>
